<compile_context>
chip_gen: v5e
topology: v5e:2x2
jax: 0.10.0
libtpu: 0.0.40
codegen_flags: <defaults>
</compile_context>

<pallas_src>
import functools

import jax
import jax.numpy as jnp
from jax.experimental import pallas as pl
from jax.experimental.pallas import tpu as pltpu


def _round_up(x, m):
    return (x + m - 1) // m * m


def _num_tensorcores():
    """2 on dual-TensorCore chips (v7x-class), else 1. Heuristic; 1 is always safe."""
    try:
        kind = jax.devices()[0].device_kind.lower()
    except Exception:
        return 1
    return 2 if "v7" in kind else 1


def _qnet_kernel(state_ref, action_ref, w1s_ref, w1a_ref, b1_ref, w2_ref,
                 b2_ref, o_ref, *, matmul_dtype):
    # state_ref:  (TM, S)   batch tile of states  (f32)
    # action_ref: (TM, A)   batch tile of actions (f32)
    # w1s_ref:    (S, H)    fc1 weight rows for the state part (VMEM-resident)
    # w1a_ref:    (A, H)    fc1 weight rows for the action part (VMEM-resident)
    # b1_ref:     (1, H)    fc1 bias (f32)
    # w2_ref:     (1, H)    fc2 weight as a row (f32)
    # b2_ref:     (1,)      fc2 bias scalar in SMEM
    # o_ref:      (TM, 1)   q values

    # In-kernel cast (no-op for f32) keeps HBM activation traffic at 1x f32.
    xs = state_ref[...].astype(matmul_dtype)
    xa = action_ref[...].astype(matmul_dtype)

    # fc1 on the MXU with f32 accumulation.
    h = jnp.dot(xs, w1s_ref[...], preferred_element_type=jnp.float32)
    h = h + jnp.dot(xa, w1a_ref[...], preferred_element_type=jnp.float32)
    # Bias + ReLU in f32 on the VPU.
    h = jnp.maximum(h + b1_ref[...], 0.0)

    # fc2 (H -> 1): VPU multiply + lane (XLU) reduction, not an N=1 MXU matmul.
    q = jnp.sum(h * w2_ref[...], axis=-1, keepdims=True) + b2_ref[0]   # (TM, 1)
    o_ref[...] = q.astype(o_ref.dtype)


def qnetwork_forward(state, action, w1, b1, w2, b2, *,
                     matmul_dtype=jnp.float32, num_tiles=None):
    """state: (B, S), action: (B, A), w1: (S+A, H), w2: (H, 1) -> (B, 1)."""
    B, S = state.shape
    _, A = action.shape
    D = S + A
    H = w1.shape[1]
    assert w1.shape == (D, H)

    if num_tiles is None:
        num_tiles = _num_tensorcores()

    # Split fc1 so [state, action] is never materialized in HBM (no concat pass).
    w1s = w1[:S].astype(matmul_dtype)
    w1a = w1[S:].astype(matmul_dtype)
    b1_row = b1.reshape(1, H).astype(jnp.float32)
    w2_row = w2.reshape(1, H).astype(jnp.float32)
    b2_s = b2.reshape(1).astype(jnp.float32)

    # One grid step per TensorCore.  Single tile: full-array block shapes, no
    # padding pass.  Two tiles (v7x): pad the batch only to a multiple of 16.
    if num_tiles == 1:
        b_pad, tm = B, B
    else:
        b_pad = _round_up(B, 8 * num_tiles)
        tm = b_pad // num_tiles
        if b_pad != B:
            state = jnp.pad(state, ((0, b_pad - B), (0, 0)))
            action = jnp.pad(action, ((0, b_pad - B), (0, 0)))
    grid = (num_tiles,)

    w_itemsize = jnp.dtype(matmul_dtype).itemsize
    flops = 2 * b_pad * D * H + 3 * b_pad * H
    bytes_accessed = (b_pad * D * 4              # state/action reads (f32)
                      + D * H * w_itemsize       # fc1 weights
                      + (2 * H + 1) * 4          # b1, w2, b2
                      + b_pad * 4)               # q writeback

    out = pl.pallas_call(
        functools.partial(_qnet_kernel, matmul_dtype=matmul_dtype),
        out_shape=jax.ShapeDtypeStruct((b_pad, 1), jnp.float32),
        grid=grid,
        in_specs=[
            pl.BlockSpec((tm, S), lambda i: (i, 0)),
            pl.BlockSpec((tm, A), lambda i: (i, 0)),
            # Whole-array blocks + constant index maps -> weights fetched once
            # and kept resident in VMEM across all grid steps.
            pl.BlockSpec((S, H), lambda i: (0, 0)),
            pl.BlockSpec((A, H), lambda i: (0, 0)),
            pl.BlockSpec((1, H), lambda i: (0, 0)),
            pl.BlockSpec((1, H), lambda i: (0, 0)),
            pl.BlockSpec(memory_space=pltpu.MemorySpace.SMEM),  # b2 scalar
        ],
        out_specs=pl.BlockSpec((tm, 1), lambda i: (i, 0)),
        compiler_params=pltpu.CompilerParams(
            dimension_semantics=("parallel",)),
        cost_estimate=pl.CostEstimate(
            flops=flops, transcendentals=0, bytes_accessed=bytes_accessed),
    )(state, action, w1s, w1a, b1_row, w2_row, b2_s)

    return out[:B]


def init_params(key, state_dim, action_dim, hidden_dim):
    """Deterministic init mimicking nn.Linear default (uniform +/- 1/sqrt(fan_in))."""
    in_dim = state_dim + action_dim
    k1, k2, k3, k4 = jax.random.split(key, 4)
    lim1 = 1.0 / jnp.sqrt(in_dim)
    lim2 = 1.0 / jnp.sqrt(hidden_dim)
    w1 = jax.random.uniform(k1, (in_dim, hidden_dim), jnp.float32, -lim1, lim1)
    b1 = jax.random.uniform(k2, (hidden_dim,), jnp.float32, -lim1, lim1)
    w2 = jax.random.uniform(k3, (hidden_dim, 1), jnp.float32, -lim2, lim2)
    b2 = jax.random.uniform(k4, (1,), jnp.float32, -lim2, lim2)
    return w1, b1, w2, b2


if __name__ == "__main__":
    # Small shapes consistent with the module; batch not a multiple of 8 so the
    # full-array-block (no-pad) path is exercised on single-core chips.
    batch, state_dim, action_dim, hidden_dim = 500, 16, 8, 32

    key = jax.random.PRNGKey(0)
    k_state, k_action, k_params = jax.random.split(key, 3)
    state = jax.random.normal(k_state, (batch, state_dim), jnp.float32)
    action = jax.random.normal(k_action, (batch, action_dim), jnp.float32)
    w1, b1, w2, b2 = init_params(k_params, state_dim, action_dim, hidden_dim)

    qnet_f32 = jax.jit(lambda s, a: qnetwork_forward(
        s, a, w1, b1, w2, b2, matmul_dtype=jnp.float32))
    qnet_bf16 = jax.jit(lambda s, a: qnetwork_forward(
        s, a, w1, b1, w2, b2, matmul_dtype=jnp.bfloat16))

    q = qnet_f32(state, action)
    jax.block_until_ready(q)

    # Pure-JAX reference of the same math (torch semantics with W stored as W.T).
    x = jnp.concatenate([state, action], axis=-1)
    h = jnp.maximum(x @ w1 + b1, 0.0)
    q_ref = h @ w2 + b2
    assert q.shape == (batch, 1)
    assert jnp.allclose(q, q_ref, atol=1e-4, rtol=1e-4)

    # bf16-matmul variant (bandwidth-friendly on v6e/v7x), loose tolerance.
    q_bf16 = qnet_bf16(state, action)
    jax.block_until_ready(q_bf16)
    assert q_bf16.shape == (batch, 1)
    assert jnp.allclose(q_bf16, q_ref, atol=1e-1, rtol=1e-1)

    print("KERNEL_OK")
</pallas_src>

<mosaic_0001>
module attributes {stable_mosaic.version = 11 : i64} {
  func.func @_qnet_kernel(%arg0: i32, %arg1: memref<500x16xf32, #tpu.memory_space<vmem>>, %arg2: memref<500x8xf32, #tpu.memory_space<vmem>>, %arg3: memref<16x32xf32, #tpu.memory_space<vmem>>, %arg4: memref<8x32xf32, #tpu.memory_space<vmem>>, %arg5: memref<1x32xf32, #tpu.memory_space<vmem>>, %arg6: memref<1x32xf32, #tpu.memory_space<vmem>>, %arg7: memref<1xf32, #tpu.memory_space<smem>>, %arg8: memref<500x1xf32, #tpu.memory_space<vmem>>) attributes {dimension_semantics = [#tpu.dimension_semantics<parallel>], iteration_bounds = array<i64: 1>, scalar_prefetch = 0 : i64, scratch_operands = 0 : i64, tpu.core_type = #tpu.core_type<tc>, window_params = [{transform_indices = @transform_0, window_bounds = array<i64: 500, 16>}, {transform_indices = @transform_1, window_bounds = array<i64: 500, 8>}, {pipeline_mode = #tpu.pipeline_mode<synchronous>, transform_indices = @transform_2, window_bounds = array<i64: 16, 32>}, {pipeline_mode = #tpu.pipeline_mode<synchronous>, transform_indices = @transform_3, window_bounds = array<i64: 8, 32>}, {pipeline_mode = #tpu.pipeline_mode<synchronous>, transform_indices = @transform_4, window_bounds = array<i64: 1, 32>}, {pipeline_mode = #tpu.pipeline_mode<synchronous>, transform_indices = @transform_5, window_bounds = array<i64: 1, 32>}, {transform_indices = @transform_6, window_bounds = array<i64: 1>}, {transform_indices = @transform_7, window_bounds = array<i64: 500, 1>}]} {
    %c0 = arith.constant 0 : index
    %c0_0 = arith.constant 0 : index
    %0 = vector.load %arg1[%c0, %c0_0] : memref<500x16xf32, #tpu.memory_space<vmem>>, vector<500x16xf32>
    %c0_1 = arith.constant 0 : index
    %c0_2 = arith.constant 0 : index
    %1 = vector.load %arg2[%c0_1, %c0_2] : memref<500x8xf32, #tpu.memory_space<vmem>>, vector<500x8xf32>
    %c0_3 = arith.constant 0 : index
    %c0_4 = arith.constant 0 : index
    %2 = vector.load %arg3[%c0_3, %c0_4] : memref<16x32xf32, #tpu.memory_space<vmem>>, vector<16x32xf32>
    %cst = arith.constant dense<0.000000e+00> : vector<500x32xf32>
    %3 = tpu.matmul %0, %2, %cst {dimension_numbers = #tpu.dot_dimension_numbers<[1], [0], [0], [1], [0, 0, 1, 1], [], []>} : vector<500x16xf32>, vector<16x32xf32>, vector<500x32xf32> -> vector<500x32xf32>
    %c0_5 = arith.constant 0 : index
    %c0_6 = arith.constant 0 : index
    %4 = vector.load %arg4[%c0_5, %c0_6] : memref<8x32xf32, #tpu.memory_space<vmem>>, vector<8x32xf32>
    %cst_7 = arith.constant dense<0.000000e+00> : vector<500x32xf32>
    %5 = tpu.matmul %1, %4, %cst_7 {dimension_numbers = #tpu.dot_dimension_numbers<[1], [0], [0], [1], [0, 0, 1, 1], [], []>} : vector<500x8xf32>, vector<8x32xf32>, vector<500x32xf32> -> vector<500x32xf32>
    %6 = arith.addf %3, %5 : vector<500x32xf32>
    %c0_8 = arith.constant 0 : index
    %c0_9 = arith.constant 0 : index
    %7 = vector.load %arg5[%c0_8, %c0_9] : memref<1x32xf32, #tpu.memory_space<vmem>>, vector<1x32xf32>
    %8 = vector.broadcast %7 : vector<1x32xf32> to vector<500x32xf32>
    %9 = arith.addf %6, %8 : vector<500x32xf32>
    %cst_10 = arith.constant 0.000000e+00 : f32
    %10 = vector.broadcast %cst_10 : f32 to vector<500x32xf32>
    %11 = arith.maximumf %9, %10 : vector<500x32xf32>
    %c0_11 = arith.constant 0 : index
    %c0_12 = arith.constant 0 : index
    %12 = vector.load %arg6[%c0_11, %c0_12] : memref<1x32xf32, #tpu.memory_space<vmem>>, vector<1x32xf32>
    %13 = vector.broadcast %12 : vector<1x32xf32> to vector<500x32xf32>
    %14 = arith.mulf %11, %13 : vector<500x32xf32>
    %cst_13 = arith.constant dense<0.000000e+00> : vector<500xf32>
    %15 = vector.multi_reduction <add>, %14, %cst_13 [1] : vector<500x32xf32> to vector<500xf32>
    %16 = vector.shape_cast %15 : vector<500xf32> to vector<500x1xf32>
    %c0_14 = arith.constant 0 : index
    %17 = memref.load %arg7[%c0_14] : memref<1xf32, #tpu.memory_space<smem>>
    %18 = vector.broadcast %17 : f32 to vector<500x1xf32>
    %19 = arith.addf %16, %18 : vector<500x1xf32>
    %c0_15 = arith.constant 0 : index
    %c0_16 = arith.constant 0 : index
    %20 = vector.load %arg8[%c0_15, %c0_16] : memref<500x1xf32, #tpu.memory_space<vmem>>, vector<500x1xf32>
    tpu.vector_store %arg8[%c0_15, %c0_16], %19 {strides = array<i32>} : memref<500x1xf32, #tpu.memory_space<vmem>>, vector<500x1xf32>,
    return
  }
  func.func @transform_0(%arg0: i32) -> (i32, i32) {
    %c0_i32 = arith.constant 0 : i32
    %c0_i32_0 = arith.constant 0 : i32
    return %arg0, %c0_i32 : i32, i32
  }
  func.func @transform_1(%arg0: i32) -> (i32, i32) {
    %c0_i32 = arith.constant 0 : i32
    %c0_i32_0 = arith.constant 0 : i32
    return %arg0, %c0_i32 : i32, i32
  }
  func.func @transform_2(%arg0: i32) -> (i32, i32) {
    %c0_i32 = arith.constant 0 : i32
    %c0_i32_0 = arith.constant 0 : i32
    %c0_i32_1 = arith.constant 0 : i32
    return %c0_i32, %c0_i32_0 : i32, i32
  }
  func.func @transform_3(%arg0: i32) -> (i32, i32) {
    %c0_i32 = arith.constant 0 : i32
    %c0_i32_0 = arith.constant 0 : i32
    %c0_i32_1 = arith.constant 0 : i32
    return %c0_i32, %c0_i32_0 : i32, i32
  }
  func.func @transform_4(%arg0: i32) -> (i32, i32) {
    %c0_i32 = arith.constant 0 : i32
    %c0_i32_0 = arith.constant 0 : i32
    %c0_i32_1 = arith.constant 0 : i32
    return %c0_i32, %c0_i32_0 : i32, i32
  }
  func.func @transform_5(%arg0: i32) -> (i32, i32) {
    %c0_i32 = arith.constant 0 : i32
    %c0_i32_0 = arith.constant 0 : i32
    %c0_i32_1 = arith.constant 0 : i32
    return %c0_i32, %c0_i32_0 : i32, i32
  }
  func.func @transform_6(%arg0: i32) -> i32 {
    %c0_i32 = arith.constant 0 : i32
    %c0_i32_0 = arith.constant 0 : i32
    return %c0_i32 : i32
  }
  func.func @transform_7(%arg0: i32) -> (i32, i32) {
    %c0_i32 = arith.constant 0 : i32
    %c0_i32_0 = arith.constant 0 : i32
    return %arg0, %c0_i32 : i32, i32
  }
}

</mosaic_0001>

<bundles_post_ra>
// kernel: _lambda_.1
= control target key start
LH: loop header
LB: loop body
LE: loop exit
PB: predicated region body
PF: predicated region fallthrough
CT: control target
= control target key end

     0   :  { %vm156_vm0 = vcmask 64512   ;;  %vm552_vm1 = vcmask 130048   ;;  %vm1145_vm2 = vcmask 261120   ;;  %vm1401_vm3 = vcmask 7168   ;;  %s2683_s2 = inlined_call_operand.vmem [shape: f32[16,32], index: 2, kind: input, shape index: {}]   ;;  %s2684_s3 = inlined_call_operand.vmem [shape: f32[8,32], index: 3, kind: input, shape index: {}]   ;;  %s2685_s1 = inlined_call_operand.vmem [shape: f32[500,8], index: 1, kind: input, shape index: {}]   ;;  %s2686_s0 = inlined_call_operand.vmem [shape: f32[500,16], index: 0, kind: input, shape index: {}]   ;;  %s2687_s4 = inlined_call_operand.vmem [shape: f32[1,32], index: 4, kind: input, shape index: {}]   ;;  %s2688_s5 = inlined_call_operand.vmem [shape: f32[1,32], index: 5, kind: input, shape index: {}]   ;;  %s2689_s6 = inlined_call_operand.<no memory space> [shape: f32[1], index: 6, kind: input, shape index: {}]   ;;  %s2690_s7 = inlined_call_operand.vmem [shape: f32[500,1], index: 7, kind: output, shape index: {}]  }
   0x1   :  { %v154_v0 = vld [vmem:[%s2683_s2 + $0x8] sm:$0xff]  ;;  %v155_v1 = vld [vmem:[%s2684_s3] sm:$0xff]  ;;  %v92_v11 = vld [vmem:[%s2685_s1 + $0x10] sm:$0xff]  ;;  %vm1332_vm4 = vcmask 257024   ;;  %vm1464_vm5 = vcmask 3072  }
   0x2   :  { %v153_v2 = vld [vmem:[%s2683_s2] sm:$0xff]  ;;  %756 = vmatpush.msra.mxu1 %v154_v0  ;;  %1597 = vmatpush.msra.mxu2 %v154_v0  ;;  %v91_v7 = vld [vmem:[%s2685_s1 + $0x8] sm:$0xff]  ;;  %v124_v12 = vld [vmem:[%s2685_s1 + $0x110] sm:$0xff] }
   0x3   :  { %v90_v3 = vld [vmem:[%s2685_s1] sm:$0xff]  ;;  %361 = vmatpush.msra.mxu0 %v155_v1  ;;  %1596 = vmatpush.msra.mxu3 %v155_v1  ;;  %v123_v8 = vld [vmem:[%s2685_s1 + $0x108] sm:$0xff]  ;;  %v29_v13 = vld [vmem:[%s2686_s0 + $0x10] sm:$0xff] }
   0x4   :  { %v122_v4 = vld [vmem:[%s2685_s1 + $0x100] sm:$0xff]  ;;  %757 = vmatpush.msra.mxu1 %v153_v2  ;;  %1598 = vmatpush.msra.mxu2 %v153_v2  ;;  %v28_v9 = vld [vmem:[%s2686_s0 + $0x8] sm:$0xff]  ;;  %v61_v14 = vld [vmem:[%s2686_s0 + $0x110] sm:$0xff] }
   0x5   :  { %v27_v5 = vld [vmem:[%s2686_s0] sm:$0xff]  ;;  %1470 = vmatmul.msk.f32.vlgmr.msra.gmra.mxu0 %vm156_vm0, %v90_v3  ;;  %1502 = vmatmul.msk.f32.vlgmr.msra.gmra.mxu3 %vm156_vm0, %v122_v4  ;;  %v60_v10 = vld [vmem:[%s2686_s0 + $0x108] sm:$0xff]  ;;  %v93_v15 = vld [vmem:[%s2685_s1 + $0x18] sm:$0xff] }
   0x6   :  { %v59_v6 = vld [vmem:[%s2686_s0 + $0x100] sm:$0xff]  ;;  %1533 = vmatmul.msk.f32.vlgmr.msra.gmra.mxu1 %vm552_vm1, %v27_v5  ;;  %v125_v16 = vld [vmem:[%s2685_s1 + $0x118] sm:$0xff]  ;;  %v95_v23 = vld [vmem:[%s2685_s1 + $0x28] sm:$0xff] }
   0x7   :  { %1565 = vmatmul.msk.f32.vlgmr.msra.gmra.mxu2 %vm552_vm1, %v59_v6  ;;  %v30_v17 = vld [vmem:[%s2686_s0 + $0x18] sm:$0xff]  ;;  %v94_v19 = vld [vmem:[%s2685_s1 + $0x20] sm:$0xff]  ;;  %v127_v24 = vld [vmem:[%s2685_s1 + $0x128] sm:$0xff] }
   0x8   :  { %v62_v18 = vld [vmem:[%s2686_s0 + $0x118] sm:$0xff]  ;;  %v126_v20 = vld [vmem:[%s2685_s1 + $0x120] sm:$0xff]  ;;  %v32_v25 = vld [vmem:[%s2686_s0 + $0x28] sm:$0xff] }
   0x9   :  { %v31_v21 = vld [vmem:[%s2686_s0 + $0x20] sm:$0xff]  ;;  %v64_v26 = vld [vmem:[%s2686_s0 + $0x128] sm:$0xff]  ;;  %v96_v27 = vld [vmem:[%s2685_s1 + $0x30] sm:$0xff] }
   0xa   :  { %v63_v22 = vld [vmem:[%s2686_s0 + $0x120] sm:$0xff]  ;;  %v128_v28 = vld [vmem:[%s2685_s1 + $0x130] sm:$0xff]  ;;  %v97_v31 = vld [vmem:[%s2685_s1 + $0x38] sm:$0xff] }
   0xb   :  { %v33_v29 = vld [vmem:[%s2686_s0 + $0x30] sm:$0xff]  ;;  %v129_v32 = vld [vmem:[%s2685_s1 + $0x138] sm:$0xff]  ;;  %v98_v35 = vld [vmem:[%s2685_s1 + $0x40] sm:$0xff] }
   0xc   :  { %v65_v30 = vld [vmem:[%s2686_s0 + $0x130] sm:$0xff]  ;;  %v34_v33 = vld [vmem:[%s2686_s0 + $0x38] sm:$0xff]  ;;  %v130_v36 = vld [vmem:[%s2685_s1 + $0x140] sm:$0xff] }
   0xd   :  { %1471 = vmatmul.msk.f32.gmra.mxu0 %vm156_vm0, %v91_v7  ;;  %1503 = vmatmul.msk.f32.gmra.mxu3 %vm156_vm0, %v123_v8  ;;  %v66_v34 = vld [vmem:[%s2686_s0 + $0x138] sm:$0xff]  ;;  %v35_v37 = vld [vmem:[%s2686_s0 + $0x40] sm:$0xff]  ;;  %v99_v39 = vld [vmem:[%s2685_s1 + $0x48] sm:$0xff] }
   0xe   :  { %1534 = vmatmul.msk.f32.gmra.mxu1 %vm552_vm1, %v28_v9  ;;  %v67_v38 = vld [vmem:[%s2686_s0 + $0x140] sm:$0xff]  ;;  %v131_v40 = vld [vmem:[%s2685_s1 + $0x148] sm:$0xff]  ;;  %v100_v43 = vld [vmem:[%s2685_s1 + $0x50] sm:$0xff] }
   0xf   :  { %1566 = vmatmul.msk.f32.gmra.mxu2 %vm552_vm1, %v60_v10  ;;  %v36_v41 = vld [vmem:[%s2686_s0 + $0x48] sm:$0xff]  ;;  %v132_v44 = vld [vmem:[%s2685_s1 + $0x150] sm:$0xff]  ;;  %v101_v47 = vld [vmem:[%s2685_s1 + $0x58] sm:$0xff] }
  0x10   :  { %v68_v42 = vld [vmem:[%s2686_s0 + $0x148] sm:$0xff]  ;;  %v37_v45 = vld [vmem:[%s2686_s0 + $0x50] sm:$0xff]  ;;  %v133_v48 = vld [vmem:[%s2685_s1 + $0x158] sm:$0xff] }
  0x11   :  { %v69_v46 = vld [vmem:[%s2686_s0 + $0x150] sm:$0xff]  ;;  %v38_v49 = vld [vmem:[%s2686_s0 + $0x58] sm:$0xff]  ;;  %v102_v51 = vld [vmem:[%s2685_s1 + $0x60] sm:$0xff] }
  0x12   :  { %v70_v50 = vld [vmem:[%s2686_s0 + $0x158] sm:$0xff]  ;;  %v134_v52 = vld [vmem:[%s2685_s1 + $0x160] sm:$0xff]  ;;  %v103_v55 = vld [vmem:[%s2685_s1 + $0x68] sm:$0xff] }
  0x13   :  { %v39_v53 = vld [vmem:[%s2686_s0 + $0x60] sm:$0xff]  ;;  %v135_v56 = vld [vmem:[%s2685_s1 + $0x168] sm:$0xff]  ;;  %v104_v59 = vld [vmem:[%s2685_s1 + $0x70] sm:$0xff] }
  0x14   :  { %v71_v54 = vld [vmem:[%s2686_s0 + $0x160] sm:$0xff]  ;;  %v40_v57 = vld [vmem:[%s2686_s0 + $0x68] sm:$0xff]  ;;  %v136_v60 = vld [vmem:[%s2685_s1 + $0x170] sm:$0xff] }
  0x15   :  { %1472 = vmatmul.msk.f32.gmra.mxu0 %vm156_vm0, %v92_v11  ;;  %1504 = vmatmul.msk.f32.gmra.mxu3 %vm156_vm0, %v124_v12  ;;  %v72_v58 = vld [vmem:[%s2686_s0 + $0x168] sm:$0xff]  ;;  %v41_v61 = vld [vmem:[%s2686_s0 + $0x70] sm:$0xff]  ;;  %v105_v63 = vld [vmem:[%s2685_s1 + $0x78] sm:$0xff] }
  0x16   :  { %1535 = vmatmul.msk.f32.gmra.mxu1 %vm552_vm1, %v29_v13  ;;  %v73_v62 = vld [vmem:[%s2686_s0 + $0x170] sm:$0xff]  ;;  %v137_v0 = vld [vmem:[%s2685_s1 + $0x178] sm:$0xff]  ;;  %v1911_v4 = vld [vmem:[%s2687_s4] ss:$0 sm:$0xff] }
  0x17   :  { %1567 = vmatmul.msk.f32.gmra.mxu2 %vm552_vm1, %v61_v14  ;;  %v42_v1 = vld [vmem:[%s2686_s0 + $0x78] sm:$0xff]  ;;  %v106_v5 = vld [vmem:[%s2685_s1 + $0x80] sm:$0xff] }
  0x18   :  { %v74_v2 = vld [vmem:[%s2686_s0 + $0x178] sm:$0xff]  ;;  %v138_v6 = vld [vmem:[%s2685_s1 + $0x180] sm:$0xff] }
  0x19   :  { %v43_v8 = vld [vmem:[%s2686_s0 + $0x80] sm:$0xff] }
  0x1a   :  { %v75_v9 = vld [vmem:[%s2686_s0 + $0x180] sm:$0xff] }
  0x1b   :  { %v1933_v12 = vld [vmem:[%s2688_s5] ss:$0 sm:$0xff] }
  0x1d   :  { %1473 = vmatmul.msk.f32.gmra.mxu0 %vm156_vm0, %v93_v15  ;;  %1505 = vmatmul.msk.f32.gmra.mxu3 %vm156_vm0, %v125_v16 }
  0x1e   :  { %1536 = vmatmul.msk.f32.gmra.mxu1 %vm552_vm1, %v30_v17 }
  0x1f   :  { %1568 = vmatmul.msk.f32.gmra.mxu2 %vm552_vm1, %v62_v18 }
  0x25   :  { %1474 = vmatmul.msk.f32.gmra.mxu0 %vm156_vm0, %v94_v19  ;;  %1506 = vmatmul.msk.f32.gmra.mxu3 %vm156_vm0, %v126_v20  ;;  %v107_v19 = vld [vmem:[%s2685_s1 + $0x88] sm:$0xff] }
  0x26   :  { %1537 = vmatmul.msk.f32.gmra.mxu1 %vm552_vm1, %v31_v21  ;;  %v44_v21 = vld [vmem:[%s2686_s0 + $0x88] sm:$0xff] }
  0x27   :  { %1569 = vmatmul.msk.f32.gmra.mxu2 %vm552_vm1, %v63_v22  ;;  %v139_v22 = vld [vmem:[%s2685_s1 + $0x188] sm:$0xff] }
  0x2d   :  { %1475 = vmatmul.msk.f32.gmra.mxu0 %vm156_vm0, %v95_v23  ;;  %1507 = vmatmul.msk.f32.gmra.mxu3 %vm156_vm0, %v127_v24 }
  0x2e   :  { %1538 = vmatmul.msk.f32.gmra.mxu1 %vm552_vm1, %v32_v25 }
  0x2f   :  { %1570 = vmatmul.msk.f32.gmra.mxu2 %vm552_vm1, %v64_v26  ;;  %v76_v26 = vld [vmem:[%s2686_s0 + $0x188] sm:$0xff] }
  0x35   :  { %1476 = vmatmul.msk.f32.gmra.mxu0 %vm156_vm0, %v96_v27  ;;  %1508 = vmatmul.msk.f32.gmra.mxu3 %vm156_vm0, %v128_v28 }
  0x36   :  { %1539 = vmatmul.msk.f32.gmra.mxu1 %vm552_vm1, %v33_v29 }
  0x37   :  { %1571 = vmatmul.msk.f32.gmra.mxu2 %vm552_vm1, %v65_v30 }
  0x3d   :  { %1477 = vmatmul.msk.f32.gmra.mxu0 %vm156_vm0, %v97_v31  ;;  %1509 = vmatmul.msk.f32.gmra.mxu3 %vm156_vm0, %v129_v32 }
  0x3e   :  { %1540 = vmatmul.msk.f32.gmra.mxu1 %vm552_vm1, %v34_v33 }
  0x3f   :  { %1572 = vmatmul.msk.f32.gmra.mxu2 %vm552_vm1, %v66_v34 }
  0x45   :  { %1478 = vmatmul.msk.f32.gmra.mxu0 %vm156_vm0, %v98_v35  ;;  %1510 = vmatmul.msk.f32.gmra.mxu3 %vm156_vm0, %v130_v36  ;;  %v108_v36 = vld [vmem:[%s2685_s1 + $0x90] sm:$0xff] }
  0x46   :  { %1541 = vmatmul.msk.f32.gmra.mxu1 %vm552_vm1, %v35_v37 }
  0x47   :  { %1573 = vmatmul.msk.f32.gmra.mxu2 %vm552_vm1, %v67_v38 }
  0x4d   :  { %1479 = vmatmul.msk.f32.gmra.mxu0 %vm156_vm0, %v99_v39  ;;  %1511 = vmatmul.msk.f32.gmra.mxu3 %vm156_vm0, %v131_v40  ;;  %v45_v39 = vld [vmem:[%s2686_s0 + $0x90] sm:$0xff] }
  0x4e   :  { %1542 = vmatmul.msk.f32.gmra.mxu1 %vm552_vm1, %v36_v41  ;;  %v140_v40 = vld [vmem:[%s2685_s1 + $0x190] sm:$0xff] }
  0x4f   :  { %1574 = vmatmul.msk.f32.gmra.mxu2 %vm552_vm1, %v68_v42 }
  0x55   :  { %1480 = vmatmul.msk.f32.gmra.mxu0 %vm156_vm0, %v100_v43  ;;  %1512 = vmatmul.msk.f32.gmra.mxu3 %vm156_vm0, %v132_v44  ;;  %v77_v44 = vld [vmem:[%s2686_s0 + $0x190] sm:$0xff] }
  0x56   :  { %1543 = vmatmul.msk.f32.gmra.mxu1 %vm552_vm1, %v37_v45 }
  0x57   :  { %1575 = vmatmul.msk.f32.gmra.mxu2 %vm552_vm1, %v69_v46 }
  0x5d   :  { %1481 = vmatmul.msk.f32.gmra.mxu0 %vm156_vm0, %v101_v47  ;;  %1513 = vmatmul.msk.f32.gmra.mxu3 %vm156_vm0, %v133_v48 }
  0x5e   :  { %1544 = vmatmul.msk.f32.gmra.mxu1 %vm552_vm1, %v38_v49 }
  0x5f   :  { %1576 = vmatmul.msk.f32.gmra.mxu2 %vm552_vm1, %v70_v50 }
  0x65   :  { %1482 = vmatmul.msk.f32.gmra.mxu0 %vm156_vm0, %v102_v51  ;;  %1514 = vmatmul.msk.f32.gmra.mxu3 %vm156_vm0, %v134_v52 }
  0x66   :  { %1545 = vmatmul.msk.f32.gmra.mxu1 %vm552_vm1, %v39_v53 }
  0x67   :  { %1577 = vmatmul.msk.f32.gmra.mxu2 %vm552_vm1, %v71_v54  ;;  %v109_v54 = vld [vmem:[%s2685_s1 + $0x98] sm:$0xff] }
  0x6d   :  { %1483 = vmatmul.msk.f32.gmra.mxu0 %vm156_vm0, %v103_v55  ;;  %1515 = vmatmul.msk.f32.gmra.mxu3 %vm156_vm0, %v135_v56  ;;  %v46_v56 = vld [vmem:[%s2686_s0 + $0x98] sm:$0xff] }
  0x6e   :  { %1546 = vmatmul.msk.f32.gmra.mxu1 %vm552_vm1, %v40_v57  ;;  %v141_v57 = vld [vmem:[%s2685_s1 + $0x198] sm:$0xff] }
  0x6f   :  { %1578 = vmatmul.msk.f32.gmra.mxu2 %vm552_vm1, %v72_v58 }
  0x75   :  { %1484 = vmatmul.msk.f32.gmra.mxu0 %vm156_vm0, %v104_v59  ;;  %1516 = vmatmul.msk.f32.gmra.mxu3 %vm156_vm0, %v136_v60 }
  0x76   :  { %1547 = vmatmul.msk.f32.gmra.mxu1 %vm552_vm1, %v41_v61  ;;  %v78_v61 = vld [vmem:[%s2686_s0 + $0x198] sm:$0xff] }
  0x77   :  { %1579 = vmatmul.msk.f32.gmra.mxu2 %vm552_vm1, %v73_v62 }
  0x7d   :  { %1485 = vmatmul.msk.f32.gmra.mxu0 %vm156_vm0, %v105_v63  ;;  %1517 = vmatmul.msk.f32.gmra.mxu3 %vm156_vm0, %v137_v0 }
  0x7e   :  { %1548 = vmatmul.msk.f32.gmra.mxu1 %vm552_vm1, %v42_v1 }
  0x7f   :  { %1580 = vmatmul.msk.f32.gmra.mxu2 %vm552_vm1, %v74_v2 }
  0x82   :  { %v363_v3 = vpop.f32.mrf.mxu0 }
  0x83   :  { %v759_v7 = vpop.f32.mrf.mxu1 }
  0x84   :  { %v760_v10 = vadd.f32 %v759_v7, %v363_v3 }
  0x85   :  { %1486 = vmatmul.msk.f32.gmra.mxu0 %vm156_vm0, %v106_v5  ;;  %1518 = vmatmul.msk.f32.gmra.mxu3 %vm156_vm0, %v138_v6 }
  0x86   :  { %v952_v11 = vadd.f32 %v1911_v4, %v760_v10  ;;  %1549 = vmatmul.msk.f32.gmra.mxu1 %vm552_vm1, %v43_v8  ;;  %v110_v8 = vld [vmem:[%s2685_s1 + $0xa0] sm:$0xff] }
  0x87   :  { %1581 = vmatmul.msk.f32.gmra.mxu2 %vm552_vm1, %v75_v9  ;;  %v47_v10 = vld [vmem:[%s2686_s0 + $0xa0] sm:$0xff] }
  0x88   :  { %v459_v13 = vpop.f32.mrf.mxu3  ;;  %v1015_v14 = vmax.f32 %v952_v11, 0.0  ;;  %v142_v11 = vld [vmem:[%s2685_s1 + $0x1a0] sm:$0xff] }
  0x8a   :  { %v855_v15 = vpop.f32.mrf.mxu2  ;;  %v366_v17 = vpop.f32.mrf.mxu0  ;;  %v1082_v18 = vmul.f32 %v1933_v12, %v1015_v14 }
  0x8b   :  { %v856_v16 = vadd.f32 %v855_v15, %v459_v13  ;;  %v762_v20 = vpop.f32.mrf.mxu1 }
  0x8c   :  { %v763_v24 = vadd.f32 %v762_v20, %v366_v17  ;;  %v1146_v25 = vsel %vm1145_vm2, %v1082_v18, 0.0 }
  0x8d   :  { %v984_v23 = vadd.f32 %v1911_v4, %v856_v16  ;;  %1147 = vadd.xlane.f32.xlu0 %v1146_v25  ;;  %1487 = vmatmul.msk.f32.gmra.mxu0 %vm156_vm0, %v107_v19  ;;  %v79_v16 = vld [vmem:[%s2686_s0 + $0x1a0] sm:$0xff] }
  0x8e   :  { %v953_v27 = vadd.f32 %v1911_v4, %v763_v24  ;;  %1550 = vmatmul.msk.f32.gmra.mxu1 %vm552_vm1, %v44_v21  ;;  %1519 = vmatmul.msk.f32.gmra.mxu3 %vm156_vm0, %v139_v22 }
  0x8f   :  { %v1047_v28 = vmax.f32 %v984_v23, 0.0  ;;  %1582 = vmatmul.msk.f32.gmra.mxu2 %vm552_vm1, %v76_v26 }
  0x90   :  { %v1016_v29 = vmax.f32 %v953_v27, 0.0  ;;  %v462_v30 = vpop.f32.mrf.mxu3  ;;  %v111_v27 = vld [vmem:[%s2685_s1 + $0xa8] sm:$0xff] }
  0x91   :  { %v1114_v31 = vmul.f32 %v1933_v12, %v1047_v28 }
  0x92   :  { %v858_v32 = vpop.f32.mrf.mxu2  ;;  %v369_v34 = vpop.f32.mrf.mxu0  ;;  %v1083_v35 = vmul.f32 %v1933_v12, %v1016_v29  ;;  %v48_v29 = vld [vmem:[%s2686_s0 + $0xa8] sm:$0xff] }
  0x93   :  { %v859_v33 = vadd.f32 %v858_v32, %v462_v30  ;;  %v1242_v37 = vsel %vm1145_vm2, %v1114_v31, 0.0  ;;  %v765_v38 = vpop.f32.mrf.mxu1  ;;  %v143_v30 = vld [vmem:[%s2685_s1 + $0x1a8] sm:$0xff] }
  0x94   :  { %1243 = vadd.xlane.f32.xlu2 %v1242_v37  ;;  %v766_v42 = vadd.f32 %v765_v38, %v369_v34  ;;  %v1149_v43 = vsel %vm1145_vm2, %v1083_v35, 0.0  ;;  %v80_v34 = vld [vmem:[%s2686_s0 + $0x1a8] sm:$0xff] }
  0x95   :  { %v985_v41 = vadd.f32 %v1911_v4, %v859_v33  ;;  %1150 = vadd.xlane.f32.xlu0 %v1149_v43  ;;  %1488 = vmatmul.msk.f32.gmra.mxu0 %vm156_vm0, %v108_v36 }
  0x96   :  { %v954_v46 = vadd.f32 %v1911_v4, %v766_v42  ;;  %1551 = vmatmul.msk.f32.gmra.mxu1 %vm552_vm1, %v45_v39  ;;  %1520 = vmatmul.msk.f32.gmra.mxu3 %vm156_vm0, %v140_v40 }
  0x97   :  { %v1048_v45 = vmax.f32 %v985_v41, 0.0  ;;  %1583 = vmatmul.msk.f32.gmra.mxu2 %vm552_vm1, %v77_v44 }
  0x98   :  { %v465_v47 = vpop.f32.mrf.mxu3  ;;  %v1017_v48 = vmax.f32 %v954_v46, 0.0  ;;  %v112_v46 = vld [vmem:[%s2685_s1 + $0xb0] sm:$0xff] }
  0x99   :  { %v1115_v49 = vmul.f32 %v1933_v12, %v1048_v45 }
  0x9a   :  { %v861_v50 = vpop.f32.mrf.mxu2  ;;  %v372_v52 = vpop.f32.mrf.mxu0  ;;  %v1084_v53 = vmul.f32 %v1933_v12, %v1017_v48  ;;  %v49_v48 = vld [vmem:[%s2686_s0 + $0xb0] sm:$0xff] }
  0x9b   :  { %v862_v51 = vadd.f32 %v861_v50, %v465_v47  ;;  %v768_v55 = vpop.f32.mrf.mxu1  ;;  %v1245_v62 = vsel %vm1145_vm2, %v1115_v49, 0.0  ;;  %v144_v49 = vld [vmem:[%s2685_s1 + $0x1b0] sm:$0xff] }
  0x9c   :  { %v769_v59 = vadd.f32 %v768_v55, %v372_v52  ;;  %v1152_v60 = vsel %vm1145_vm2, %v1084_v53, 0.0  ;;  %v81_v52 = vld [vmem:[%s2686_s0 + $0x1b0] sm:$0xff] }
  0x9d   :  { %v986_v58 = vadd.f32 %v1911_v4, %v862_v51  ;;  %1153 = vadd.xlane.f32.xlu1 %v1152_v60  ;;  %1489 = vmatmul.msk.f32.gmra.mxu0 %vm156_vm0, %v109_v54 }
  0x9e   :  { %1552 = vmatmul.msk.f32.gmra.mxu1 %vm552_vm1, %v46_v56  ;;  %1521 = vmatmul.msk.f32.gmra.mxu3 %vm156_vm0, %v141_v57  ;;  %v955_v0 = vadd.f32 %v1911_v4, %v769_v59 }
  0x9f   :  { %v1049_v63 = vmax.f32 %v986_v58, 0.0  ;;  %1584 = vmatmul.msk.f32.gmra.mxu2 %vm552_vm1, %v78_v61  ;;  %1246 = vadd.xlane.f32.xlu0 %v1245_v62 }
  0xa0   :  { %v468_v1 = vpop.f32.mrf.mxu3  ;;  %v1018_v13 = vmax.f32 %v955_v0, 0.0 }
  0xa1   :  { %v1116_v2 = vmul.f32 %v1933_v12, %v1049_v63 }
  0xa2   :  { %v864_v3 = vpop.f32.mrf.mxu2  ;;  %v375_v6 = vpop.f32.mrf.mxu0  ;;  %v1085_v21 = vmul.f32 %v1933_v12, %v1018_v13 }
  0xa3   :  { %v865_v5 = vadd.f32 %v864_v3, %v468_v1  ;;  %v1248_v7 = vsel %vm1145_vm2, %v1116_v2, 0.0  ;;  %v771_v9 = vpop.f32.mrf.mxu1  ;;  %v113_v1 = vld [vmem:[%s2685_s1 + $0xb8] sm:$0xff] }
  0xa4   :  { %v772_v15 = vadd.f32 %v771_v9, %v375_v6  ;;  %v1155_v33 = vsel %vm1145_vm2, %v1085_v21, 0.0  ;;  %v50_v3 = vld [vmem:[%s2686_s0 + $0xb8] sm:$0xff]  ;;  %v114_v21 = vld [vmem:[%s2685_s1 + $0xc0] sm:$0xff] }
  0xa5   :  { %v987_v14 = vadd.f32 %v1911_v4, %v865_v5  ;;  %1249 = vadd.xlane.f32.xlu1 %v1248_v7  ;;  %1490 = vmatmul.msk.f32.gmra.mxu0 %vm156_vm0, %v110_v8  ;;  %v145_v5 = vld [vmem:[%s2685_s1 + $0x1b8] sm:$0xff] }
  0xa6   :  { %v956_v18 = vadd.f32 %v1911_v4, %v772_v15  ;;  %1553 = vmatmul.msk.f32.gmra.mxu1 %vm552_vm1, %v47_v10  ;;  %1522 = vmatmul.msk.f32.gmra.mxu3 %vm156_vm0, %v142_v11  ;;  %v82_v9 = vld [vmem:[%s2686_s0 + $0x1b8] sm:$0xff] }
  0xa7   :  { %v1050_v17 = vmax.f32 %v987_v14, 0.0  ;;  %1585 = vmatmul.msk.f32.gmra.mxu2 %vm552_vm1, %v79_v16 }
  0xa8   :  { %v471_v19 = vpop.f32.mrf.mxu3  ;;  %v1019_v23 = vmax.f32 %v956_v18, 0.0 }
  0xa9   :  { %v1117_v20 = vmul.f32 %v1933_v12, %v1050_v17 }
  0xaa   :  { %v867_v22 = vpop.f32.mrf.mxu2  ;;  %v378_v24 = vpop.f32.mrf.mxu0  ;;  %v1086_v37 = vmul.f32 %v1933_v12, %v1019_v23  ;;  %v51_v23 = vld [vmem:[%s2686_s0 + $0xc0] sm:$0xff] }
  0xab   :  { %v868_v25 = vadd.f32 %v867_v22, %v471_v19  ;;  %v1251_v26 = vsel %vm1145_vm2, %v1117_v20, 0.0  ;;  %v774_v28 = vpop.f32.mrf.mxu1 }
  0xac   :  { %1252 = vadd.xlane.f32.xlu2 %v1251_v26  ;;  %v775_v32 = vadd.f32 %v774_v28, %v378_v24  ;;  %v1158_v44 = vsel %vm1145_vm2, %v1086_v37, 0.0  ;;  %v146_v24 = vld [vmem:[%s2685_s1 + $0x1c0] sm:$0xff] }
  0xad   :  { %v988_v31 = vadd.f32 %v1911_v4, %v868_v25  ;;  %1156 = vadd.xlane.f32.xlu1 %v1155_v33  ;;  %1491 = vmatmul.msk.f32.gmra.mxu0 %vm156_vm0, %v111_v27  ;;  %v83_v28 = vld [vmem:[%s2686_s0 + $0x1c0] sm:$0xff] }
  0xae   :  { %v957_v36 = vadd.f32 %v1911_v4, %v775_v32  ;;  %1554 = vmatmul.msk.f32.gmra.mxu1 %vm552_vm1, %v48_v29  ;;  %1523 = vmatmul.msk.f32.gmra.mxu3 %vm156_vm0, %v143_v30 }
  0xaf   :  { %v1051_v35 = vmax.f32 %v988_v31, 0.0  ;;  %1586 = vmatmul.msk.f32.gmra.mxu2 %vm552_vm1, %v80_v34 }
  0xb0   :  { %v474_v38 = vpop.f32.mrf.mxu3  ;;  %v1020_v41 = vmax.f32 %v957_v36, 0.0 }
  0xb1   :  { %v1118_v39 = vmul.f32 %v1933_v12, %v1051_v35 }
  0xb2   :  { %v870_v40 = vpop.f32.mrf.mxu2  ;;  %v381_v42 = vpop.f32.mrf.mxu0  ;;  %v1087_v55 = vmul.f32 %v1933_v12, %v1020_v41  ;;  %v52_v41 = vld [vmem:[%s2686_s0 + $0xc8] sm:$0xff] }
  0xb3   :  { %v871_v43 = vadd.f32 %v870_v40, %v474_v38  ;;  %v1254_v45 = vsel %vm1145_vm2, %v1118_v39, 0.0  ;;  %v777_v47 = vpop.f32.mrf.mxu1  ;;  %v115_v39 = vld [vmem:[%s2685_s1 + $0xc8] sm:$0xff] }
  0xb4   :  { %1159 = vadd.xlane.f32.xlu2 %v1158_v44  ;;  %1255 = vadd.xlane.f32.xlu0 %v1254_v45  ;;  %v778_v50 = vadd.f32 %v777_v47, %v381_v42  ;;  %v1161_v62 = vsel %vm1145_vm2, %v1087_v55, 0.0  ;;  %v147_v42 = vld [vmem:[%s2685_s1 + $0x1c8] sm:$0xff] }
  0xb5   :  { %v989_v51 = vadd.f32 %v1911_v4, %v871_v43  ;;  %1492 = vmatmul.msk.f32.gmra.mxu0 %vm156_vm0, %v112_v46  ;;  %v84_v46 = vld [vmem:[%s2686_s0 + $0x1c8] sm:$0xff] }
  0xb6   :  { %v958_v53 = vadd.f32 %v1911_v4, %v778_v50  ;;  %1555 = vmatmul.msk.f32.gmra.mxu1 %vm552_vm1, %v49_v48  ;;  %1524 = vmatmul.msk.f32.gmra.mxu3 %vm156_vm0, %v144_v49 }
  0xb7   :  { %v1052_v54 = vmax.f32 %v989_v51, 0.0  ;;  %1587 = vmatmul.msk.f32.gmra.mxu2 %vm552_vm1, %v81_v52 }
  0xb8   :  { %v1021_v56 = vmax.f32 %v958_v53, 0.0  ;;  %v477_v57 = vpop.f32.mrf.mxu3 }
  0xb9   :  { %v1119_v58 = vmul.f32 %v1933_v12, %v1052_v54 }
  0xba   :  { %v873_v59 = vpop.f32.mrf.mxu2  ;;  %v384_v60 = vpop.f32.mrf.mxu0  ;;  %v1088_v0 = vmul.f32 %v1933_v12, %v1021_v56 }
  0xbb   :  { %v874_v61 = vadd.f32 %v873_v59, %v477_v57  ;;  %v1257_v63 = vsel %vm1145_vm2, %v1119_v58, 0.0  ;;  %v780_v2 = vpop.f32.mrf.mxu1  ;;  %v116_v57 = vld [vmem:[%s2685_s1 + $0xd0] sm:$0xff] }
  0xbc   :  { %1162 = vadd.xlane.f32.xlu2 %v1161_v62  ;;  %1258 = vadd.xlane.f32.xlu1 %v1257_v63  ;;  %v781_v6 = vadd.f32 %v780_v2, %v384_v60  ;;  %v1164_v8 = vsel %vm1145_vm2, %v1088_v0, 0.0  ;;  %v53_v59 = vld [vmem:[%s2686_s0 + $0xd0] sm:$0xff] }
  0xbd   :  { %v990_v7 = vadd.f32 %v1911_v4, %v874_v61  ;;  %1165 = vadd.xlane.f32.xlu0 %v1164_v8  ;;  %1493 = vmatmul.msk.f32.gmra.mxu0 %vm156_vm0, %v113_v1  ;;  %v148_v60 = vld [vmem:[%s2685_s1 + $0x1d0] sm:$0xff] }
  0xbe   :  { %v959_v10 = vadd.f32 %v1911_v4, %v781_v6  ;;  %1556 = vmatmul.msk.f32.gmra.mxu1 %vm552_vm1, %v50_v3  ;;  %1525 = vmatmul.msk.f32.gmra.mxu3 %vm156_vm0, %v145_v5  ;;  %v85_v0 = vld [vmem:[%s2686_s0 + $0x1d0] sm:$0xff] }
  0xbf   :  { %v1053_v11 = vmax.f32 %v990_v7, 0.0  ;;  %1588 = vmatmul.msk.f32.gmra.mxu2 %vm552_vm1, %v82_v9 }
  0xc0   :  { %v1022_v13 = vmax.f32 %v959_v10, 0.0  ;;  %v480_v14 = vpop.f32.mrf.mxu3 }
  0xc1   :  { %v1120_v15 = vmul.f32 %v1933_v12, %v1053_v11 }
  0xc2   :  { %v876_v16 = vpop.f32.mrf.mxu2  ;;  %v387_v17 = vpop.f32.mrf.mxu0  ;;  %v1089_v20 = vmul.f32 %v1933_v12, %v1022_v13  ;;  %v117_v13 = vld [vmem:[%s2685_s1 + $0xd8] sm:$0xff] }
  0xc3   :  { %v877_v18 = vadd.f32 %v876_v16, %v480_v14  ;;  %v1260_v19 = vsel %vm1145_vm2, %v1120_v15, 0.0  ;;  %v783_v22 = vpop.f32.mrf.mxu1  ;;  %v54_v15 = vld [vmem:[%s2686_s0 + $0xd8] sm:$0xff] }
  0xc4   :  { %1261 = vadd.xlane.f32.xlu2 %v1260_v19  ;;  %v784_v25 = vadd.f32 %v783_v22, %v387_v17  ;;  %v1167_v27 = vsel %vm1145_vm2, %v1089_v20, 0.0  ;;  %v149_v16 = vld [vmem:[%s2685_s1 + $0x1d8] sm:$0xff] }
  0xc5   :  { %v991_v26 = vadd.f32 %v1911_v4, %v877_v18  ;;  %1168 = vadd.xlane.f32.xlu1 %v1167_v27  ;;  %1494 = vmatmul.msk.f32.gmra.mxu0 %vm156_vm0, %v114_v21  ;;  %v86_v20 = vld [vmem:[%s2686_s0 + $0x1d8] sm:$0xff] }
  0xc6   :  { %v960_v29 = vadd.f32 %v1911_v4, %v784_v25  ;;  %1557 = vmatmul.msk.f32.gmra.mxu1 %vm552_vm1, %v51_v23  ;;  %1526 = vmatmul.msk.f32.gmra.mxu3 %vm156_vm0, %v146_v24 }
  0xc7   :  { %v1054_v30 = vmax.f32 %v991_v26, 0.0  ;;  %1589 = vmatmul.msk.f32.gmra.mxu2 %vm552_vm1, %v83_v28 }
  0xc8   :  { %v1023_v31 = vmax.f32 %v960_v29, 0.0  ;;  %v483_v32 = vpop.f32.mrf.mxu3 }
  0xc9   :  { %v1121_v33 = vmul.f32 %v1933_v12, %v1054_v30 }
  0xca   :  { %v879_v34 = vpop.f32.mrf.mxu2  ;;  %v390_v35 = vpop.f32.mrf.mxu0  ;;  %v1090_v37 = vmul.f32 %v1933_v12, %v1023_v31  ;;  %v118_v31 = vld [vmem:[%s2685_s1 + $0xe0] sm:$0xff] }
  0xcb   :  { %v880_v36 = vadd.f32 %v879_v34, %v483_v32  ;;  %v1263_v38 = vsel %vm1145_vm2, %v1121_v33, 0.0  ;;  %v786_v40 = vpop.f32.mrf.mxu1  ;;  %v55_v33 = vld [vmem:[%s2686_s0 + $0xe0] sm:$0xff] }
  0xcc   :  { %1264 = vadd.xlane.f32.xlu0 %v1263_v38  ;;  %v787_v43 = vadd.f32 %v786_v40, %v390_v35  ;;  %v1170_v45 = vsel %vm1145_vm2, %v1090_v37, 0.0  ;;  %v150_v34 = vld [vmem:[%s2685_s1 + $0x1e0] sm:$0xff] }
  0xcd   :  { %v992_v44 = vadd.f32 %v1911_v4, %v880_v36  ;;  %1171 = vadd.xlane.f32.xlu2 %v1170_v45  ;;  %1495 = vmatmul.msk.f32.gmra.mxu0 %vm156_vm0, %v115_v39  ;;  %v87_v38 = vld [vmem:[%s2686_s0 + $0x1e0] sm:$0xff] }
  0xce   :  { %v961_v47 = vadd.f32 %v1911_v4, %v787_v43  ;;  %1558 = vmatmul.msk.f32.gmra.mxu1 %vm552_vm1, %v52_v41  ;;  %1527 = vmatmul.msk.f32.gmra.mxu3 %vm156_vm0, %v147_v42 }
  0xcf   :  { %v1055_v48 = vmax.f32 %v992_v44, 0.0  ;;  %1590 = vmatmul.msk.f32.gmra.mxu2 %vm552_vm1, %v84_v46 }
  0xd0   :  { %v1024_v49 = vmax.f32 %v961_v47, 0.0  ;;  %v486_v50 = vpop.f32.mrf.mxu3 }
  0xd1   :  { %v1122_v51 = vmul.f32 %v1933_v12, %v1055_v48 }
  0xd2   :  { %v882_v52 = vpop.f32.mrf.mxu2  ;;  %v393_v53 = vpop.f32.mrf.mxu0  ;;  %v1091_v56 = vmul.f32 %v1933_v12, %v1024_v49  ;;  %v119_v49 = vld [vmem:[%s2685_s1 + $0xe8] sm:$0xff] }
  0xd3   :  { %v883_v54 = vadd.f32 %v882_v52, %v486_v50  ;;  %v1266_v55 = vsel %vm1145_vm2, %v1122_v51, 0.0  ;;  %v789_v58 = vpop.f32.mrf.mxu1  ;;  %v56_v51 = vld [vmem:[%s2686_s0 + $0xe8] sm:$0xff] }
  0xd4   :  { %1267 = vadd.xlane.f32.xlu1 %v1266_v55  ;;  %v790_v61 = vadd.f32 %v789_v58, %v393_v53  ;;  %v1173_v63 = vsel %vm1145_vm2, %v1091_v56, 0.0  ;;  %v151_v52 = vld [vmem:[%s2685_s1 + $0x1e8] sm:$0xff] }
  0xd5   :  { %v993_v62 = vadd.f32 %v1911_v4, %v883_v54  ;;  %1174 = vadd.xlane.f32.xlu0 %v1173_v63  ;;  %1496 = vmatmul.msk.f32.gmra.mxu0 %vm156_vm0, %v116_v57  ;;  %v88_v56 = vld [vmem:[%s2686_s0 + $0x1e8] sm:$0xff] }
  0xd6   :  { %v962_v1 = vadd.f32 %v1911_v4, %v790_v61  ;;  %1559 = vmatmul.msk.f32.gmra.mxu1 %vm552_vm1, %v53_v59  ;;  %1528 = vmatmul.msk.f32.gmra.mxu3 %vm156_vm0, %v148_v60 }
  0xd7   :  { %v1056_v2 = vmax.f32 %v993_v62, 0.0  ;;  %1591 = vmatmul.msk.f32.gmra.mxu2 %vm552_vm1, %v85_v0 }
  0xd8   :  { %v1025_v3 = vmax.f32 %v962_v1, 0.0  ;;  %v489_v5 = vpop.f32.mrf.mxu3 }
  0xd9   :  { %v1123_v6 = vmul.f32 %v1933_v12, %v1056_v2 }
  0xda   :  { %v885_v7 = vpop.f32.mrf.mxu2  ;;  %v396_v8 = vpop.f32.mrf.mxu0  ;;  %v1092_v11 = vmul.f32 %v1933_v12, %v1025_v3  ;;  %v120_v3 = vld [vmem:[%s2685_s1 + $0xf0] sm:$0xff] }
  0xdb   :  { %v886_v9 = vadd.f32 %v885_v7, %v489_v5  ;;  %v1269_v10 = vsel %vm1145_vm2, %v1123_v6, 0.0  ;;  %v792_v14 = vpop.f32.mrf.mxu1  ;;  %v57_v6 = vld [vmem:[%s2686_s0 + $0xf0] sm:$0xff] }
  0xdc   :  { %1270 = vadd.xlane.f32.xlu2 %v1269_v10  ;;  %v793_v17 = vadd.f32 %v792_v14, %v396_v8  ;;  %v1176_v19 = vsel %vm1145_vm2, %v1092_v11, 0.0  ;;  %v152_v7 = vld [vmem:[%s2685_s1 + $0x1f0] sm:$0xf] }
  0xdd   :  { %v994_v18 = vadd.f32 %v1911_v4, %v886_v9  ;;  %1177 = vadd.xlane.f32.xlu1 %v1176_v19  ;;  %1497 = vmatmul.msk.f32.gmra.mxu0 %vm156_vm0, %v117_v13  ;;  %v89_v11 = vld [vmem:[%s2686_s0 + $0x1f0] sm:$0xf] }
  0xde   :  { %v963_v21 = vadd.f32 %v1911_v4, %v793_v17  ;;  %1560 = vmatmul.msk.f32.gmra.mxu1 %vm552_vm1, %v54_v15  ;;  %1529 = vmatmul.msk.f32.gmra.mxu3 %vm156_vm0, %v149_v16 }
  0xdf   :  { %v1057_v22 = vmax.f32 %v994_v18, 0.0  ;;  %1592 = vmatmul.msk.f32.gmra.mxu2 %vm552_vm1, %v86_v20 }
  0xe0   :  { %v1026_v23 = vmax.f32 %v963_v21, 0.0  ;;  %v492_v24 = vpop.f32.mrf.mxu3 }
  0xe1   :  { %v1124_v25 = vmul.f32 %v1933_v12, %v1057_v22 }
  0xe2   :  { %v888_v26 = vpop.f32.mrf.mxu2  ;;  %v399_v27 = vpop.f32.mrf.mxu0  ;;  %v1093_v29 = vmul.f32 %v1933_v12, %v1026_v23  ;;  %v121_v23 = vld [vmem:[%s2685_s1 + $0xf8] sm:$0xff] }
  0xe3   :  { %v889_v28 = vadd.f32 %v888_v26, %v492_v24  ;;  %v1272_v30 = vsel %vm1145_vm2, %v1124_v25, 0.0  ;;  %v795_v32 = vpop.f32.mrf.mxu1  ;;  %v58_v25 = vld [vmem:[%s2686_s0 + $0xf8] sm:$0xff] }
  0xe4   :  { %1273 = vadd.xlane.f32.xlu0 %v1272_v30  ;;  %v796_v35 = vadd.f32 %v795_v32, %v399_v27  ;;  %v1179_v37 = vsel %vm1145_vm2, %v1093_v29, 0.0 }
  0xe5   :  { %v995_v36 = vadd.f32 %v1911_v4, %v889_v28  ;;  %1180 = vadd.xlane.f32.xlu2 %v1179_v37  ;;  %1498 = vmatmul.msk.f32.gmra.mxu0 %vm156_vm0, %v118_v31  ;;  %v2258_v31 = vstv %s2689_s6 }
  0xe6   :  { %v964_v39 = vadd.f32 %v1911_v4, %v796_v35  ;;  %1561 = vmatmul.msk.f32.gmra.mxu1 %vm552_vm1, %v55_v33  ;;  %1530 = vmatmul.msk.f32.gmra.mxu3 %vm156_vm0, %v150_v34 }
  0xe7   :  { %v1058_v40 = vmax.f32 %v995_v36, 0.0  ;;  %1593 = vmatmul.msk.f32.gmra.mxu2 %vm552_vm1, %v87_v38 }
  0xe8   :  { %v1027_v41 = vmax.f32 %v964_v39, 0.0  ;;  %v495_v42 = vpop.f32.mrf.mxu3 }
  0xe9   :  { %v1125_v43 = vmul.f32 %v1933_v12, %v1058_v40 }
  0xea   :  { %v891_v44 = vpop.f32.mrf.mxu2  ;;  %v402_v45 = vpop.f32.mrf.mxu0  ;;  %v1094_v48 = vmul.f32 %v1933_v12, %v1027_v41 }
  0xeb   :  { %v892_v46 = vadd.f32 %v891_v44, %v495_v42  ;;  %v1275_v47 = vsel %vm1145_vm2, %v1125_v43, 0.0  ;;  %v798_v50 = vpop.f32.mrf.mxu1 }
  0xec   :  { %1276 = vadd.xlane.f32.xlu1 %v1275_v47  ;;  %v799_v53 = vadd.f32 %v798_v50, %v402_v45  ;;  %v1182_v55 = vsel %vm1145_vm2, %v1094_v48, 0.0 }
  0xed   :  { %v996_v54 = vadd.f32 %v1911_v4, %v892_v46  ;;  %1183 = vadd.xlane.f32.xlu0 %v1182_v55  ;;  %1499 = vmatmul.msk.f32.gmra.mxu0 %vm156_vm0, %v119_v49 }
  0xee   :  { %v965_v57 = vadd.f32 %v1911_v4, %v799_v53  ;;  %1562 = vmatmul.msk.f32.gmra.mxu1 %vm552_vm1, %v56_v51  ;;  %1531 = vmatmul.msk.f32.gmra.mxu3 %vm156_vm0, %v151_v52 }
  0xef   :  { %v1059_v58 = vmax.f32 %v996_v54, 0.0  ;;  %1594 = vmatmul.msk.f32.gmra.mxu2 %vm552_vm1, %v88_v56 }
  0xf0   :  { %v1028_v59 = vmax.f32 %v965_v57, 0.0  ;;  %v498_v60 = vpop.f32.mrf.mxu3 }
  0xf1   :  { %v1126_v61 = vmul.f32 %v1933_v12, %v1059_v58 }
  0xf2   :  { %v894_v62 = vpop.f32.mrf.mxu2  ;;  %v405_v63 = vpop.f32.mrf.mxu0  ;;  %v1095_v2 = vmul.f32 %v1933_v12, %v1028_v59 }
  0xf3   :  { %v895_v0 = vadd.f32 %v894_v62, %v498_v60  ;;  %v1278_v1 = vsel %vm1145_vm2, %v1126_v61, 0.0  ;;  %v801_v5 = vpop.f32.mrf.mxu1 }
  0xf4   :  { %1279 = vadd.xlane.f32.xlu2 %v1278_v1  ;;  %v802_v8 = vadd.f32 %v801_v5, %v405_v63  ;;  %v1185_v10 = vsel %vm1145_vm2, %v1095_v2, 0.0 }
  0xf5   :  { %v997_v9 = vadd.f32 %v1911_v4, %v895_v0  ;;  %1186 = vadd.xlane.f32.xlu1 %v1185_v10  ;;  %1500 = vmatmul.msk.f32.gmra.mxu0 %vm156_vm0, %v120_v3 }
  0xf6   :  { %v966_v13 = vadd.f32 %v1911_v4, %v802_v8  ;;  %1563 = vmatmul.msk.f32.gmra.mxu1 %vm552_vm1, %v57_v6  ;;  %1532 = vmatmul.msk.f32.gmra.mxu3 %vm156_vm0, %v152_v7 }
  0xf7   :  { %v1060_v14 = vmax.f32 %v997_v9, 0.0  ;;  %1595 = vmatmul.msk.f32.gmra.mxu2 %vm552_vm1, %v89_v11 }
  0xf8   :  { %v1029_v15 = vmax.f32 %v966_v13, 0.0  ;;  %v501_v16 = vpop.f32.mrf.mxu3 }
  0xf9   :  { %v1127_v17 = vmul.f32 %v1933_v12, %v1060_v14 }
  0xfa   :  { %v897_v18 = vpop.f32.mrf.mxu2  ;;  %v408_v19 = vpop.f32.mrf.mxu0  ;;  %v1096_v21 = vmul.f32 %v1933_v12, %v1029_v15 }
  0xfb   :  { %v898_v20 = vadd.f32 %v897_v18, %v501_v16  ;;  %v1281_v22 = vsel %vm1145_vm2, %v1127_v17, 0.0  ;;  %v804_v24 = vpop.f32.mrf.mxu1 }
  0xfc   :  { %1282 = vadd.xlane.f32.xlu0 %v1281_v22  ;;  %v805_v26 = vadd.f32 %v804_v24, %v408_v19  ;;  %v1188_v28 = vsel %vm1145_vm2, %v1096_v21, 0.0 }
  0xfd   :  { %v998_v27 = vadd.f32 %v1911_v4, %v898_v20  ;;  %1189 = vadd.xlane.f32.xlu2 %v1188_v28  ;;  %1501 = vmatmul.msk.f32.gmra.mxu0 %vm156_vm0, %v121_v23 }
  0xfe   :  { %v967_v29 = vadd.f32 %v1911_v4, %v805_v26  ;;  %1564 = vmatmul.msk.f32.gmra.mxu1 %vm552_vm1, %v58_v25 }
  0xff   :  { %v1061_v30 = vmax.f32 %v998_v27, 0.0 }
 0x100   :  { %v1030_v32 = vmax.f32 %v967_v29, 0.0  ;;  %v1148_v33 = vpop.xlane.xlu0 %1147  ;;  %v504_v34 = vpop.f32.mrf.mxu3 }
 0x101   :  { %v1128_v35 = vmul.f32 %v1933_v12, %v1061_v30  ;;  %v1338_v36 = vadd.f32 %v2258_v31, %v1148_v33 }
 0x102   :  { %v900_v37 = vpop.f32.mrf.mxu2  ;;  %v411_v38 = vpop.f32.mrf.mxu0  ;;  %v1097_v41 = vmul.f32 %v1933_v12, %v1030_v32 }
 0x103   :  { %v901_v39 = vadd.f32 %v900_v37, %v504_v34  ;;  %v1284_v40 = vsel %vm1145_vm2, %v1128_v35, 0.0  ;;  %1402 = vst.msk [vmem:[%s2690_s7] sm:$0xff] %vm1401_vm3, %v1338_v36  ;;  %v807_v42 = vpop.f32.mrf.mxu1 }
 0x104   :  { %1285 = vadd.xlane.f32.xlu1 %v1284_v40  ;;  %v808_v43 = vadd.f32 %v807_v42, %v411_v38  ;;  %v1191_v45 = vsel %vm1145_vm2, %v1097_v41, 0.0 }
 0x105   :  { %v999_v44 = vadd.f32 %v1911_v4, %v901_v39  ;;  %1192 = vadd.xlane.f32.xlu0 %v1191_v45 }
 0x106   :  { %v968_v46 = vadd.f32 %v1911_v4, %v808_v43 }
 0x107   :  { %v1062_v47 = vmax.f32 %v999_v44, 0.0  ;;  %v1244_v48 = vpop.xlane.xlu2 %1243 }
 0x108   :  { %v1370_v49 = vadd.f32 %v2258_v31, %v1244_v48  ;;  %v1031_v50 = vmax.f32 %v968_v46, 0.0  ;;  %v1151_v51 = vpop.xlane.xlu0 %1150  ;;  %v507_v52 = vpop.f32.mrf.mxu3 }
 0x109   :  { %v1129_v53 = vmul.f32 %v1933_v12, %v1062_v47  ;;  %v1339_v54 = vadd.f32 %v2258_v31, %v1151_v51 }
 0x10a   :  { %v903_v55 = vpop.f32.mrf.mxu2  ;;  %1434 = vst.msk [vmem:[%s2690_s7 + $0x100] sm:$0xff] %vm1401_vm3, %v1370_v49  ;;  %v414_v56 = vpop.f32.mrf.mxu0  ;;  %v1098_v59 = vmul.f32 %v1933_v12, %v1031_v50 }
 0x10b   :  { %v904_v57 = vadd.f32 %v903_v55, %v507_v52  ;;  %v1287_v58 = vsel %vm1145_vm2, %v1129_v53, 0.0  ;;  %1403 = vst.msk [vmem:[%s2690_s7 + $0x8] sm:$0xff] %vm1401_vm3, %v1339_v54  ;;  %v810_v60 = vpop.f32.mrf.mxu1 }
 0x10c   :  { %1288 = vadd.xlane.f32.xlu2 %v1287_v58  ;;  %v811_v61 = vadd.f32 %v810_v60, %v414_v56  ;;  %v1194_v63 = vsel %vm1145_vm2, %v1098_v59, 0.0 }
 0x10d   :  { %v1000_v62 = vadd.f32 %v1911_v4, %v904_v57  ;;  %1195 = vadd.xlane.f32.xlu1 %v1194_v63 }
 0x10e   :  { %v969_v0 = vadd.f32 %v1911_v4, %v811_v61 }
 0x10f   :  { %v1063_v1 = vmax.f32 %v1000_v62, 0.0 }
 0x110   :  { %v1032_v2 = vmax.f32 %v969_v0, 0.0  ;;  %v1154_v3 = vpop.xlane.xlu1 %1153 }
 0x111   :  { %v1130_v5 = vmul.f32 %v1933_v12, %v1063_v1  ;;  %v1340_v6 = vadd.f32 %v2258_v31, %v1154_v3  ;;  %v510_v7 = vpop.f32.mrf.mxu3 }
 0x112   :  { %v417_v8 = vpop.f32.mrf.mxu0  ;;  %v906_v9 = vpop.f32.mrf.mxu2  ;;  %v1099_v10 = vmul.f32 %v1933_v12, %v1032_v2 }
 0x113   :  { %v1290_v11 = vsel %vm1145_vm2, %v1130_v5, 0.0  ;;  %1404 = vst.msk [vmem:[%s2690_s7 + $0x10] sm:$0xff] %vm1401_vm3, %v1340_v6  ;;  %v813_v13 = vpop.f32.mrf.mxu1  ;;  %v907_v14 = vadd.f32 %v906_v9, %v510_v7  ;;  %v1247_v15 = vpop.xlane.xlu0 %1246 }
 0x114   :  { %1291 = vadd.xlane.f32.xlu0 %v1290_v11  ;;  %v814_v16 = vadd.f32 %v813_v13, %v417_v8  ;;  %v1197_v17 = vsel %vm1145_vm2, %v1099_v10, 0.0  ;;  %v1371_v18 = vadd.f32 %v2258_v31, %v1247_v15 }
 0x115   :  { %v1001_v19 = vadd.f32 %v1911_v4, %v907_v14  ;;  %1198 = vadd.xlane.f32.xlu2 %v1197_v17 }
 0x116   :  { %v970_v20 = vadd.f32 %v1911_v4, %v814_v16  ;;  %1435 = vst.msk [vmem:[%s2690_s7 + $0x108] sm:$0xff] %vm1401_vm3, %v1371_v18 }
 0x117   :  { %v1064_v21 = vmax.f32 %v1001_v19, 0.0 }
 0x118   :  { %v1033_v22 = vmax.f32 %v970_v20, 0.0  ;;  %v1250_v23 = vpop.xlane.xlu1 %1249 }
 0x119   :  { %v1372_v24 = vadd.f32 %v2258_v31, %v1250_v23  ;;  %v513_v25 = vpop.f32.mrf.mxu3  ;;  %v1131_v26 = vmul.f32 %v1933_v12, %v1064_v21 }
 0x11a   :  { %v420_v27 = vpop.f32.mrf.mxu0  ;;  %v909_v28 = vpop.f32.mrf.mxu2  ;;  %v1100_v29 = vmul.f32 %v1933_v12, %v1033_v22 }
 0x11b   :  { %1436 = vst.msk [vmem:[%s2690_s7 + $0x110] sm:$0xff] %vm1401_vm3, %v1372_v24  ;;  %v816_v30 = vpop.f32.mrf.mxu1  ;;  %v910_v32 = vadd.f32 %v909_v28, %v513_v25  ;;  %v1293_v33 = vsel %vm1145_vm2, %v1131_v26, 0.0 }
 0x11c   :  { %v817_v34 = vadd.f32 %v816_v30, %v420_v27  ;;  %1294 = vadd.xlane.f32.xlu1 %v1293_v33  ;;  %v1200_v35 = vsel %vm1145_vm2, %v1100_v29, 0.0  ;;  %v2368_v29 = vld [vmem:[%s2687_s4] ss:$0 sm:$0xff] }
 0x11d   :  { %v1002_v36 = vadd.f32 %v1911_v4, %v910_v32  ;;  %1201 = vadd.xlane.f32.xlu0 %v1200_v35 }
 0x11e   :  { %v971_v37 = vadd.f32 %v1911_v4, %v817_v34 }
 0x11f   :  { %v1253_v38 = vpop.xlane.xlu2 %1252  ;;  %v1065_v39 = vmax.f32 %v1002_v36, 0.0 }
 0x120   :  { %v1373_v40 = vadd.f32 %v2258_v31, %v1253_v38  ;;  %v1034_v41 = vmax.f32 %v971_v37, 0.0  ;;  %v1157_v42 = vpop.xlane.xlu1 %1156 }
 0x121   :  { %v1341_v43 = vadd.f32 %v2258_v31, %v1157_v42  ;;  %v516_v44 = vpop.f32.mrf.mxu3  ;;  %v1132_v45 = vmul.f32 %v1933_v12, %v1065_v39  ;;  %v2381_v39 = vld [vmem:[%s2688_s5] ss:$0 sm:$0xff] }
 0x122   :  { %1437 = vst.msk [vmem:[%s2690_s7 + $0x118] sm:$0xff] %vm1401_vm3, %v1373_v40  ;;  %v423_v46 = vpop.f32.mrf.mxu0  ;;  %v912_v47 = vpop.f32.mrf.mxu2  ;;  %v1101_v48 = vmul.f32 %v1933_v12, %v1034_v41 }
 0x123   :  { %1405 = vst.msk [vmem:[%s2690_s7 + $0x18] sm:$0xff] %vm1401_vm3, %v1341_v43  ;;  %v819_v49 = vpop.f32.mrf.mxu1  ;;  %v913_v50 = vadd.f32 %v912_v47, %v516_v44  ;;  %v1296_v51 = vsel %vm1145_vm2, %v1132_v45, 0.0 }
 0x124   :  { %v820_v52 = vadd.f32 %v819_v49, %v423_v46  ;;  %1297 = vadd.xlane.f32.xlu2 %v1296_v51  ;;  %v1203_v53 = vsel %vm1145_vm2, %v1101_v48, 0.0 }
 0x125   :  { %v1003_v54 = vadd.f32 %v1911_v4, %v913_v50  ;;  %1204 = vadd.xlane.f32.xlu1 %v1203_v53 }
 0x126   :  { %v972_v55 = vadd.f32 %v1911_v4, %v820_v52 }
 0x127   :  { %v1160_v56 = vpop.xlane.xlu2 %1159  ;;  %v1256_v57 = vpop.xlane.xlu0 %1255  ;;  %v1066_v58 = vmax.f32 %v1003_v54, 0.0 }
 0x128   :  { %v1342_v59 = vadd.f32 %v2258_v31, %v1160_v56  ;;  %v1374_v60 = vadd.f32 %v2258_v31, %v1256_v57  ;;  %v1035_v61 = vmax.f32 %v972_v55, 0.0 }
 0x129   :  { %v519_v62 = vpop.f32.mrf.mxu3  ;;  %v1133_v63 = vmul.f32 %v1933_v12, %v1066_v58 }
 0x12a   :  { %1406 = vst.msk [vmem:[%s2690_s7 + $0x20] sm:$0xff] %vm1401_vm3, %v1342_v59  ;;  %v426_v0 = vpop.f32.mrf.mxu0  ;;  %v915_v1 = vpop.f32.mrf.mxu2  ;;  %v1102_v2 = vmul.f32 %v1933_v12, %v1035_v61 }
 0x12b   :  { %1438 = vst.msk [vmem:[%s2690_s7 + $0x120] sm:$0xff] %vm1401_vm3, %v1374_v60  ;;  %v822_v3 = vpop.f32.mrf.mxu1  ;;  %v916_v5 = vadd.f32 %v915_v1, %v519_v62  ;;  %v1299_v6 = vsel %vm1145_vm2, %v1133_v63, 0.0 }
 0x12c   :  { %v823_v7 = vadd.f32 %v822_v3, %v426_v0  ;;  %v1206_v8 = vsel %vm1145_vm2, %v1102_v2, 0.0  ;;  %1300 = vadd.xlane.f32.xlu0 %v1299_v6 }
 0x12d   :  { %v1004_v9 = vadd.f32 %v1911_v4, %v916_v5  ;;  %1207 = vadd.xlane.f32.xlu2 %v1206_v8 }
 0x12e   :  { %v973_v10 = vadd.f32 %v1911_v4, %v823_v7 }
 0x12f   :  { %v1163_v11 = vpop.xlane.xlu2 %1162  ;;  %v1259_v13 = vpop.xlane.xlu1 %1258  ;;  %v1067_v14 = vmax.f32 %v1004_v9, 0.0 }
 0x130   :  { %v1343_v15 = vadd.f32 %v2258_v31, %v1163_v11  ;;  %v1375_v16 = vadd.f32 %v2258_v31, %v1259_v13  ;;  %v1036_v17 = vmax.f32 %v973_v10, 0.0  ;;  %v1166_v18 = vpop.xlane.xlu0 %1165 }
 0x131   :  { %v1344_v19 = vadd.f32 %v2258_v31, %v1166_v18  ;;  %v522_v20 = vpop.f32.mrf.mxu3  ;;  %v1134_v21 = vmul.f32 %v1933_v12, %v1067_v14 }
 0x132   :  { %1407 = vst.msk [vmem:[%s2690_s7 + $0x28] sm:$0xff] %vm1401_vm3, %v1343_v15  ;;  %v429_v4 = vpop.f32.mrf.mxu0  ;;  %v918_v22 = vpop.f32.mrf.mxu2  ;;  %v1103_v23 = vmul.f32 %v1933_v12, %v1036_v17 }
 0x133   :  { %1439 = vst.msk [vmem:[%s2690_s7 + $0x128] sm:$0xff] %vm1401_vm3, %v1375_v16  ;;  %v825_v24 = vpop.f32.mrf.mxu1  ;;  %v919_v25 = vadd.f32 %v918_v22, %v522_v20  ;;  %v1302_v26 = vsel %vm1145_vm2, %v1134_v21, 0.0 }
 0x134   :  { %1408 = vst.msk [vmem:[%s2690_s7 + $0x30] sm:$0xff] %vm1401_vm3, %v1344_v19  ;;  %v826_v27 = vadd.f32 %v825_v24, %v429_v4  ;;  %1303 = vadd.xlane.f32.xlu1 %v1302_v26  ;;  %v1209_v28 = vsel %vm1145_vm2, %v1103_v23, 0.0 }
 0x135   :  { %v1005_v12 = vadd.f32 %v2368_v29, %v919_v25  ;;  %1210 = vadd.xlane.f32.xlu0 %v1209_v28 }
 0x136   :  { %v974_v30 = vadd.f32 %v2368_v29, %v826_v27 }
 0x137   :  { %v1262_v32 = vpop.xlane.xlu2 %1261  ;;  %v1068_v33 = vmax.f32 %v1005_v12, 0.0 }
 0x138   :  { %v1376_v34 = vadd.f32 %v2258_v31, %v1262_v32  ;;  %v1037_v35 = vmax.f32 %v974_v30, 0.0  ;;  %v1169_v36 = vpop.xlane.xlu1 %1168 }
 0x139   :  { %v1345_v37 = vadd.f32 %v2258_v31, %v1169_v36  ;;  %v525_v38 = vpop.f32.mrf.mxu3  ;;  %v1135_v40 = vmul.f32 %v2381_v39, %v1068_v33 }
 0x13a   :  { %1440 = vst.msk [vmem:[%s2690_s7 + $0x130] sm:$0xff] %vm1401_vm3, %v1376_v34  ;;  %v432_v41 = vpop.f32.mrf.mxu0  ;;  %v921_v42 = vpop.f32.mrf.mxu2  ;;  %v1104_v43 = vmul.f32 %v2381_v39, %v1037_v35 }
 0x13b   :  { %1409 = vst.msk [vmem:[%s2690_s7 + $0x38] sm:$0xff] %vm1401_vm3, %v1345_v37  ;;  %v828_v44 = vpop.f32.mrf.mxu1  ;;  %v922_v45 = vadd.f32 %v921_v42, %v525_v38  ;;  %v1305_v46 = vsel %vm1145_vm2, %v1135_v40, 0.0 }
 0x13c   :  { %v829_v47 = vadd.f32 %v828_v44, %v432_v41  ;;  %1306 = vadd.xlane.f32.xlu2 %v1305_v46  ;;  %v1212_v48 = vsel %vm1145_vm2, %v1104_v43, 0.0 }
 0x13d   :  { %v1006_v49 = vadd.f32 %v2368_v29, %v922_v45  ;;  %1213 = vadd.xlane.f32.xlu1 %v1212_v48 }
 0x13e   :  { %v975_v50 = vadd.f32 %v2368_v29, %v829_v47 }
 0x13f   :  { %v1265_v51 = vpop.xlane.xlu0 %1264  ;;  %v1069_v52 = vmax.f32 %v1006_v49, 0.0 }
 0x140   :  { %v1377_v53 = vadd.f32 %v2258_v31, %v1265_v51  ;;  %v1038_v54 = vmax.f32 %v975_v50, 0.0  ;;  %v1172_v55 = vpop.xlane.xlu2 %1171 }
 0x141   :  { %v1346_v56 = vadd.f32 %v2258_v31, %v1172_v55  ;;  %v528_v57 = vpop.f32.mrf.mxu3  ;;  %v1136_v58 = vmul.f32 %v2381_v39, %v1069_v52 }
 0x142   :  { %1441 = vst.msk [vmem:[%s2690_s7 + $0x138] sm:$0xff] %vm1401_vm3, %v1377_v53  ;;  %v435_v59 = vpop.f32.mrf.mxu0  ;;  %v924_v60 = vpop.f32.mrf.mxu2  ;;  %v1105_v61 = vmul.f32 %v2381_v39, %v1038_v54 }
 0x143   :  { %1410 = vst.msk [vmem:[%s2690_s7 + $0x40] sm:$0xff] %vm1401_vm3, %v1346_v56  ;;  %v831_v62 = vpop.f32.mrf.mxu1  ;;  %v925_v63 = vadd.f32 %v924_v60, %v528_v57  ;;  %v1308_v0 = vsel %vm1145_vm2, %v1136_v58, 0.0 }
 0x144   :  { %v832_v1 = vadd.f32 %v831_v62, %v435_v59  ;;  %v1215_v2 = vsel %vm1145_vm2, %v1105_v61, 0.0  ;;  %1309 = vadd.xlane.f32.xlu0 %v1308_v0 }
 0x145   :  { %v1007_v3 = vadd.f32 %v2368_v29, %v925_v63  ;;  %1216 = vadd.xlane.f32.xlu2 %v1215_v2 }
 0x146   :  { %v976_v5 = vadd.f32 %v2368_v29, %v832_v1 }
 0x147   :  { %v1268_v6 = vpop.xlane.xlu1 %1267  ;;  %v1070_v7 = vmax.f32 %v1007_v3, 0.0 }
 0x148   :  { %v1378_v8 = vadd.f32 %v2258_v31, %v1268_v6  ;;  %v1039_v9 = vmax.f32 %v976_v5, 0.0  ;;  %v1175_v10 = vpop.xlane.xlu0 %1174 }
 0x149   :  { %v1347_v11 = vadd.f32 %v2258_v31, %v1175_v10  ;;  %v531_v13 = vpop.f32.mrf.mxu3  ;;  %v1137_v14 = vmul.f32 %v2381_v39, %v1070_v7 }
 0x14a   :  { %1442 = vst.msk [vmem:[%s2690_s7 + $0x140] sm:$0xff] %vm1401_vm3, %v1378_v8  ;;  %v438_v15 = vpop.f32.mrf.mxu0  ;;  %v927_v16 = vpop.f32.mrf.mxu2  ;;  %v1106_v17 = vmul.f32 %v2381_v39, %v1039_v9 }
 0x14b   :  { %1411 = vst.msk [vmem:[%s2690_s7 + $0x48] sm:$0xff] %vm1401_vm3, %v1347_v11  ;;  %v834_v18 = vpop.f32.mrf.mxu1  ;;  %v928_v19 = vadd.f32 %v927_v16, %v531_v13  ;;  %v1311_v20 = vsel %vm1145_vm2, %v1137_v14, 0.0 }
 0x14c   :  { %v835_v21 = vadd.f32 %v834_v18, %v438_v15  ;;  %1312 = vadd.xlane.f32.xlu1 %v1311_v20  ;;  %v1218_v4 = vsel %vm1145_vm2, %v1106_v17, 0.0 }
 0x14d   :  { %v1008_v22 = vadd.f32 %v2368_v29, %v928_v19  ;;  %1219 = vadd.xlane.f32.xlu0 %v1218_v4 }
 0x14e   :  { %v977_v23 = vadd.f32 %v2368_v29, %v835_v21 }
 0x14f   :  { %v1271_v24 = vpop.xlane.xlu2 %1270  ;;  %v1071_v25 = vmax.f32 %v1008_v22, 0.0 }
 0x150   :  { %v1379_v26 = vadd.f32 %v2258_v31, %v1271_v24  ;;  %v1040_v27 = vmax.f32 %v977_v23, 0.0  ;;  %v1178_v28 = vpop.xlane.xlu1 %1177 }
 0x151   :  { %v1348_v12 = vadd.f32 %v2258_v31, %v1178_v28  ;;  %v534_v30 = vpop.f32.mrf.mxu3  ;;  %v1138_v32 = vmul.f32 %v2381_v39, %v1071_v25 }
 0x152   :  { %1443 = vst.msk [vmem:[%s2690_s7 + $0x148] sm:$0xff] %vm1401_vm3, %v1379_v26  ;;  %v441_v33 = vpop.f32.mrf.mxu0  ;;  %v930_v34 = vpop.f32.mrf.mxu2  ;;  %v1107_v35 = vmul.f32 %v2381_v39, %v1040_v27 }
 0x153   :  { %1412 = vst.msk [vmem:[%s2690_s7 + $0x50] sm:$0xff] %vm1401_vm3, %v1348_v12  ;;  %v837_v36 = vpop.f32.mrf.mxu1  ;;  %v931_v37 = vadd.f32 %v930_v34, %v534_v30  ;;  %v1314_v38 = vsel %vm1145_vm2, %v1138_v32, 0.0 }
 0x154   :  { %v838_v40 = vadd.f32 %v837_v36, %v441_v33  ;;  %1315 = vadd.xlane.f32.xlu2 %v1314_v38  ;;  %v1221_v41 = vsel %vm1145_vm2, %v1107_v35, 0.0 }
 0x155   :  { %v1009_v42 = vadd.f32 %v2368_v29, %v931_v37  ;;  %1222 = vadd.xlane.f32.xlu1 %v1221_v41 }
 0x156   :  { %v978_v43 = vadd.f32 %v2368_v29, %v838_v40 }
 0x157   :  { %v1274_v44 = vpop.xlane.xlu0 %1273  ;;  %v1072_v45 = vmax.f32 %v1009_v42, 0.0 }
 0x158   :  { %v1380_v46 = vadd.f32 %v2258_v31, %v1274_v44  ;;  %v1041_v47 = vmax.f32 %v978_v43, 0.0  ;;  %v1181_v48 = vpop.xlane.xlu2 %1180 }
 0x159   :  { %v1349_v49 = vadd.f32 %v2258_v31, %v1181_v48  ;;  %v537_v50 = vpop.f32.mrf.mxu3  ;;  %v1139_v51 = vmul.f32 %v2381_v39, %v1072_v45 }
 0x15a   :  { %1444 = vst.msk [vmem:[%s2690_s7 + $0x150] sm:$0xff] %vm1401_vm3, %v1380_v46  ;;  %v444_v52 = vpop.f32.mrf.mxu0  ;;  %v933_v53 = vpop.f32.mrf.mxu2  ;;  %v1108_v54 = vmul.f32 %v2381_v39, %v1041_v47 }
 0x15b   :  { %1413 = vst.msk [vmem:[%s2690_s7 + $0x58] sm:$0xff] %vm1401_vm3, %v1349_v49  ;;  %v840_v55 = vpop.f32.mrf.mxu1  ;;  %v934_v56 = vadd.f32 %v933_v53, %v537_v50  ;;  %v1317_v57 = vsel %vm1145_vm2, %v1139_v51, 0.0 }
 0x15c   :  { %v841_v58 = vadd.f32 %v840_v55, %v444_v52  ;;  %v1224_v59 = vsel %vm1145_vm2, %v1108_v54, 0.0  ;;  %1318 = vadd.xlane.f32.xlu0 %v1317_v57 }
 0x15d   :  { %v1010_v60 = vadd.f32 %v2368_v29, %v934_v56  ;;  %1225 = vadd.xlane.f32.xlu2 %v1224_v59 }
 0x15e   :  { %v979_v61 = vadd.f32 %v2368_v29, %v841_v58 }
 0x15f   :  { %v1277_v62 = vpop.xlane.xlu1 %1276  ;;  %v1073_v63 = vmax.f32 %v1010_v60, 0.0 }
 0x160   :  { %v1381_v0 = vadd.f32 %v2258_v31, %v1277_v62  ;;  %v1042_v1 = vmax.f32 %v979_v61, 0.0  ;;  %v1184_v2 = vpop.xlane.xlu0 %1183 }
 0x161   :  { %v1350_v3 = vadd.f32 %v2258_v31, %v1184_v2  ;;  %v540_v5 = vpop.f32.mrf.mxu3  ;;  %v1140_v6 = vmul.f32 %v2381_v39, %v1073_v63 }
 0x162   :  { %1445 = vst.msk [vmem:[%s2690_s7 + $0x158] sm:$0xff] %vm1401_vm3, %v1381_v0  ;;  %v447_v7 = vpop.f32.mrf.mxu0  ;;  %v936_v8 = vpop.f32.mrf.mxu2  ;;  %v1109_v9 = vmul.f32 %v2381_v39, %v1042_v1 }
 0x163   :  { %1414 = vst.msk [vmem:[%s2690_s7 + $0x60] sm:$0xff] %vm1401_vm3, %v1350_v3  ;;  %v843_v10 = vpop.f32.mrf.mxu1  ;;  %v937_v11 = vadd.f32 %v936_v8, %v540_v5  ;;  %v1320_v13 = vsel %vm1145_vm2, %v1140_v6, 0.0 }
 0x164   :  { %v844_v14 = vadd.f32 %v843_v10, %v447_v7  ;;  %1321 = vadd.xlane.f32.xlu1 %v1320_v13  ;;  %v1227_v15 = vsel %vm1145_vm2, %v1109_v9, 0.0 }
 0x165   :  { %v1011_v16 = vadd.f32 %v2368_v29, %v937_v11  ;;  %1228 = vadd.xlane.f32.xlu0 %v1227_v15 }
 0x166   :  { %v980_v17 = vadd.f32 %v2368_v29, %v844_v14 }
 0x167   :  { %v1280_v18 = vpop.xlane.xlu2 %1279  ;;  %v1074_v19 = vmax.f32 %v1011_v16, 0.0 }
 0x168   :  { %v1382_v20 = vadd.f32 %v2258_v31, %v1280_v18  ;;  %v1043_v21 = vmax.f32 %v980_v17, 0.0  ;;  %v1187_v4 = vpop.xlane.xlu1 %1186 }
 0x169   :  { %v1351_v22 = vadd.f32 %v2258_v31, %v1187_v4  ;;  %v1141_v23 = vmul.f32 %v2381_v39, %v1074_v19  ;;  %v543_v24 = vpop.f32.mrf.mxu3 }
 0x16a   :  { %1446 = vst.msk [vmem:[%s2690_s7 + $0x160] sm:$0xff] %vm1401_vm3, %v1382_v20  ;;  %v450_v25 = vpop.f32.mrf.mxu0  ;;  %v1110_v26 = vmul.f32 %v2381_v39, %v1043_v21  ;;  %v939_v27 = vpop.f32.mrf.mxu2 }
 0x16b   :  { %1415 = vst.msk [vmem:[%s2690_s7 + $0x68] sm:$0xff] %vm1401_vm3, %v1351_v22  ;;  %v846_v28 = vpop.f32.mrf.mxu1  ;;  %v1323_v12 = vsel %vm1145_vm2, %v1141_v23, 0.0  ;;  %v940_v46 = vadd.f32 %v939_v27, %v543_v24 }
 0x16c   :  { %v847_v30 = vadd.f32 %v846_v28, %v450_v25  ;;  %1324 = vadd.xlane.f32.xlu2 %v1323_v12  ;;  %v1230_v32 = vsel %vm1145_vm2, %v1110_v26, 0.0 }
 0x16d   :  { %1231 = vadd.xlane.f32.xlu1 %v1230_v32  ;;  %v1012_v52 = vadd.f32 %v2368_v29, %v940_v46 }
 0x16e   :  { %v981_v33 = vadd.f32 %v2368_v29, %v847_v30 }
 0x16f   :  { %v1283_v34 = vpop.xlane.xlu0 %1282  ;;  %v1075_v61 = vmax.f32 %v1012_v52, 0.0 }
 0x170   :  { %v1383_v35 = vadd.f32 %v2258_v31, %v1283_v34  ;;  %v1044_v36 = vmax.f32 %v981_v33, 0.0  ;;  %v1190_v37 = vpop.xlane.xlu2 %1189 }
 0x171   :  { %v1352_v38 = vadd.f32 %v2258_v31, %v1190_v37  ;;  %v546_v40 = vpop.f32.mrf.mxu3  ;;  %v1142_v10 = vmul.f32 %v2381_v39, %v1075_v61 }
 0x172   :  { %1447 = vst.msk [vmem:[%s2690_s7 + $0x168] sm:$0xff] %vm1401_vm3, %v1383_v35  ;;  %v453_v41 = vpop.f32.mrf.mxu0  ;;  %v1111_v42 = vmul.f32 %v2381_v39, %v1044_v36  ;;  %v942_v43 = vpop.f32.mrf.mxu2 }
 0x173   :  { %1416 = vst.msk [vmem:[%s2690_s7 + $0x70] sm:$0xff] %vm1401_vm3, %v1352_v38  ;;  %v849_v44 = vpop.f32.mrf.mxu1  ;;  %v943_v63 = vadd.f32 %v942_v43, %v546_v40  ;;  %v1326_v17 = vsel %vm1145_vm2, %v1142_v10, 0.0 }
 0x174   :  { %v850_v45 = vadd.f32 %v849_v44, %v453_v41  ;;  %v1233_v47 = vsel %vm1145_vm2, %v1111_v42, 0.0 }
 0x175   :  { %1234 = vadd.xlane.f32.xlu2 %v1233_v47  ;;  %v1013_v8 = vadd.f32 %v2368_v29, %v943_v63 }
 0x176   :  { %v982_v48 = vadd.f32 %v2368_v29, %v850_v45 }
 0x177   :  { %v1286_v49 = vpop.xlane.xlu1 %1285  ;;  %v1076_v15 = vmax.f32 %v1013_v8, 0.0 }
 0x178   :  { %v1384_v50 = vadd.f32 %v2258_v31, %v1286_v49  ;;  %v1045_v51 = vmax.f32 %v982_v48, 0.0  ;;  %v1193_v53 = vpop.xlane.xlu0 %1192 }
 0x179   :  { %v1353_v54 = vadd.f32 %v2258_v31, %v1193_v53  ;;  %v549_v55 = vpop.f32.mrf.mxu3  ;;  %v1143_v21 = vmul.f32 %v2381_v39, %v1076_v15 }
 0x17a   :  { %1448 = vst.msk [vmem:[%s2690_s7 + $0x170] sm:$0xff] %vm1401_vm3, %v1384_v50  ;;  %v456_v56 = vpop.f32.mrf.mxu0  ;;  %v1112_v57 = vmul.f32 %v2381_v39, %v1045_v51  ;;  %v945_v58 = vpop.f32.mrf.mxu2 }
 0x17b   :  { %1417 = vst.msk [vmem:[%s2690_s7 + $0x78] sm:$0xff] %vm1401_vm3, %v1353_v54  ;;  %v852_v59 = vpop.f32.mrf.mxu1  ;;  %v946_v60 = vadd.f32 %v945_v58, %v549_v55  ;;  %v1329_v22 = vsel %vm1145_vm2, %v1143_v21, 0.0 }
 0x17c   :  { %v853_v62 = vadd.f32 %v852_v59, %v456_v56  ;;  %v1236_v0 = vsel %vm1145_vm2, %v1112_v57, 0.0 }
 0x17d   :  { %1237 = vadd.xlane.f32.xlu0 %v1236_v0  ;;  %v1014_v1 = vadd.f32 %v2368_v29, %v946_v60 }
 0x17e   :  { %v983_v2 = vadd.f32 %v2368_v29, %v853_v62 }
 0x17f   :  { %v1289_v3 = vpop.xlane.xlu2 %1288  ;;  %v1077_v6 = vmax.f32 %v1014_v1, 0.0 }
 0x180   :  { %v1385_v5 = vadd.f32 %v2258_v31, %v1289_v3  ;;  %v1046_v7 = vmax.f32 %v983_v2, 0.0  ;;  %v1196_v9 = vpop.xlane.xlu1 %1195 }
 0x181   :  { %v1354_v11 = vadd.f32 %v2258_v31, %v1196_v9  ;;  %v1144_v13 = vmul.f32 %v2381_v39, %v1077_v6 }
 0x182   :  { %1449 = vst.msk [vmem:[%s2690_s7 + $0x178] sm:$0xff] %vm1401_vm3, %v1385_v5  ;;  %v1113_v14 = vmul.f32 %v2381_v39, %v1046_v7 }
 0x183   :  { %1418 = vst.msk [vmem:[%s2690_s7 + $0x80] sm:$0xff] %vm1401_vm3, %v1354_v11  ;;  %v1333_v29 = vsel %vm1332_vm4, %v1144_v13, 0.0 }
 0x184   :  { %v1239_v16 = vsel %vm1145_vm2, %v1113_v14, 0.0  ;;  %1334 = vadd.xlane.f32.xlu2 %v1333_v29 }
 0x185   :  { %1240 = vadd.xlane.f32.xlu1 %v1239_v16  ;;  %1327 = vadd.xlane.f32.xlu0 %v1326_v17 }
 0x187   :  { %v1292_v18 = vpop.xlane.xlu0 %1291 }
 0x188   :  { %v1386_v19 = vadd.f32 %v2258_v31, %v1292_v18  ;;  %v1199_v20 = vpop.xlane.xlu2 %1198 }
 0x189   :  { %v1355_v4 = vadd.f32 %v2258_v31, %v1199_v20 }
 0x18a   :  { %1450 = vst.msk [vmem:[%s2690_s7 + $0x180] sm:$0xff] %vm1401_vm3, %v1386_v19 }
 0x18b   :  { %1419 = vst.msk [vmem:[%s2690_s7 + $0x88] sm:$0xff] %vm1401_vm3, %v1355_v4 }
 0x18d   :  { %1330 = vadd.xlane.f32.xlu1 %v1329_v22 }
 0x18f   :  { %v1295_v23 = vpop.xlane.xlu1 %1294 }
 0x190   :  { %v1387_v24 = vadd.f32 %v2258_v31, %v1295_v23  ;;  %v1202_v25 = vpop.xlane.xlu0 %1201 }
 0x191   :  { %v1356_v39 = vadd.f32 %v2258_v31, %v1202_v25 }
 0x192   :  { %1451 = vst.msk [vmem:[%s2690_s7 + $0x188] sm:$0xff] %vm1401_vm3, %v1387_v24 }
 0x193   :  { %1420 = vst.msk [vmem:[%s2690_s7 + $0x90] sm:$0xff] %vm1401_vm3, %v1356_v39 }
 0x197   :  { %v1298_v26 = vpop.xlane.xlu2 %1297 }
 0x198   :  { %v1388_v27 = vadd.f32 %v2258_v31, %v1298_v26  ;;  %v1205_v28 = vpop.xlane.xlu1 %1204 }
 0x199   :  { %v1357_v12 = vadd.f32 %v2258_v31, %v1205_v28 }
 0x19a   :  { %1452 = vst.msk [vmem:[%s2690_s7 + $0x190] sm:$0xff] %vm1401_vm3, %v1388_v27 }
 0x19b   :  { %1421 = vst.msk [vmem:[%s2690_s7 + $0x98] sm:$0xff] %vm1401_vm3, %v1357_v12 }
 0x19f   :  { %v1301_v30 = vpop.xlane.xlu0 %1300 }
 0x1a0   :  { %v1208_v32 = vpop.xlane.xlu2 %1207  ;;  %v1389_v33 = vadd.f32 %v2258_v31, %v1301_v30 }
 0x1a1   :  { %v1358_v34 = vadd.f32 %v2258_v31, %v1208_v32 }
 0x1a2   :  { %1453 = vst.msk [vmem:[%s2690_s7 + $0x198] sm:$0xff] %vm1401_vm3, %v1389_v33 }
 0x1a3   :  { %1422 = vst.msk [vmem:[%s2690_s7 + $0xa0] sm:$0xff] %vm1401_vm3, %v1358_v34 }
 0x1a7   :  { %v1304_v35 = vpop.xlane.xlu1 %1303 }
 0x1a8   :  { %v1390_v36 = vadd.f32 %v2258_v31, %v1304_v35  ;;  %v1211_v37 = vpop.xlane.xlu0 %1210 }
 0x1a9   :  { %v1359_v38 = vadd.f32 %v2258_v31, %v1211_v37 }
 0x1aa   :  { %1454 = vst.msk [vmem:[%s2690_s7 + $0x1a0] sm:$0xff] %vm1401_vm3, %v1390_v36 }
 0x1ab   :  { %1423 = vst.msk [vmem:[%s2690_s7 + $0xa8] sm:$0xff] %vm1401_vm3, %v1359_v38 }
 0x1af   :  { %v1307_v40 = vpop.xlane.xlu2 %1306 }
 0x1b0   :  { %v1391_v41 = vadd.f32 %v2258_v31, %v1307_v40  ;;  %v1214_v42 = vpop.xlane.xlu1 %1213 }
 0x1b1   :  { %v1360_v43 = vadd.f32 %v2258_v31, %v1214_v42 }
 0x1b2   :  { %1455 = vst.msk [vmem:[%s2690_s7 + $0x1a8] sm:$0xff] %vm1401_vm3, %v1391_v41 }
 0x1b3   :  { %1424 = vst.msk [vmem:[%s2690_s7 + $0xb0] sm:$0xff] %vm1401_vm3, %v1360_v43 }
 0x1b7   :  { %v1310_v44 = vpop.xlane.xlu0 %1309 }
 0x1b8   :  { %v1217_v45 = vpop.xlane.xlu2 %1216  ;;  %v1392_v46 = vadd.f32 %v2258_v31, %v1310_v44 }
 0x1b9   :  { %v1361_v47 = vadd.f32 %v2258_v31, %v1217_v45 }
 0x1ba   :  { %1456 = vst.msk [vmem:[%s2690_s7 + $0x1b0] sm:$0xff] %vm1401_vm3, %v1392_v46 }
 0x1bb   :  { %1425 = vst.msk [vmem:[%s2690_s7 + $0xb8] sm:$0xff] %vm1401_vm3, %v1361_v47 }
 0x1bf   :  { %v1313_v48 = vpop.xlane.xlu1 %1312 }
 0x1c0   :  { %v1393_v49 = vadd.f32 %v2258_v31, %v1313_v48  ;;  %v1220_v50 = vpop.xlane.xlu0 %1219 }
 0x1c1   :  { %v1362_v51 = vadd.f32 %v2258_v31, %v1220_v50 }
 0x1c2   :  { %1457 = vst.msk [vmem:[%s2690_s7 + $0x1b8] sm:$0xff] %vm1401_vm3, %v1393_v49 }
 0x1c3   :  { %1426 = vst.msk [vmem:[%s2690_s7 + $0xc0] sm:$0xff] %vm1401_vm3, %v1362_v51 }
 0x1c7   :  { %v1316_v52 = vpop.xlane.xlu2 %1315 }
 0x1c8   :  { %v1394_v53 = vadd.f32 %v2258_v31, %v1316_v52  ;;  %v1223_v54 = vpop.xlane.xlu1 %1222 }
 0x1c9   :  { %v1363_v55 = vadd.f32 %v2258_v31, %v1223_v54 }
 0x1ca   :  { %1458 = vst.msk [vmem:[%s2690_s7 + $0x1c0] sm:$0xff] %vm1401_vm3, %v1394_v53 }
 0x1cb   :  { %1427 = vst.msk [vmem:[%s2690_s7 + $0xc8] sm:$0xff] %vm1401_vm3, %v1363_v55 }
 0x1cf   :  { %v1319_v56 = vpop.xlane.xlu0 %1318 }
 0x1d0   :  { %v1226_v57 = vpop.xlane.xlu2 %1225  ;;  %v1395_v58 = vadd.f32 %v2258_v31, %v1319_v56 }
 0x1d1   :  { %v1364_v59 = vadd.f32 %v2258_v31, %v1226_v57 }
 0x1d2   :  { %1459 = vst.msk [vmem:[%s2690_s7 + $0x1c8] sm:$0xff] %vm1401_vm3, %v1395_v58 }
 0x1d3   :  { %1428 = vst.msk [vmem:[%s2690_s7 + $0xd0] sm:$0xff] %vm1401_vm3, %v1364_v59 }
 0x1d7   :  { %v1322_v60 = vpop.xlane.xlu1 %1321 }
 0x1d8   :  { %v1396_v61 = vadd.f32 %v2258_v31, %v1322_v60  ;;  %v1229_v62 = vpop.xlane.xlu0 %1228 }
 0x1d9   :  { %v1365_v63 = vadd.f32 %v2258_v31, %v1229_v62 }
 0x1da   :  { %1460 = vst.msk [vmem:[%s2690_s7 + $0x1d0] sm:$0xff] %vm1401_vm3, %v1396_v61 }
 0x1db   :  { %1429 = vst.msk [vmem:[%s2690_s7 + $0xd8] sm:$0xff] %vm1401_vm3, %v1365_v63 }
 0x1df   :  { %v1325_v0 = vpop.xlane.xlu2 %1324 }
 0x1e0   :  { %v1397_v1 = vadd.f32 %v2258_v31, %v1325_v0  ;;  %v1232_v2 = vpop.xlane.xlu1 %1231 }
 0x1e1   :  { %v1366_v3 = vadd.f32 %v2258_v31, %v1232_v2 }
 0x1e2   :  { %1461 = vst.msk [vmem:[%s2690_s7 + $0x1d8] sm:$0xff] %vm1401_vm3, %v1397_v1 }
 0x1e3   :  { %1430 = vst.msk [vmem:[%s2690_s7 + $0xe0] sm:$0xff] %vm1401_vm3, %v1366_v3 }
 0x1e8   :  { %v1235_v5 = vpop.xlane.xlu2 %1234 }
 0x1e9   :  { %v1367_v6 = vadd.f32 %v2258_v31, %v1235_v5 }
 0x1eb   :  { %1431 = vst.msk [vmem:[%s2690_s7 + $0xe8] sm:$0xff] %vm1401_vm3, %v1367_v6 }
 0x1f0   :  { %v1238_v7 = vpop.xlane.xlu0 %1237 }
 0x1f1   :  { %v1368_v8 = vadd.f32 %v2258_v31, %v1238_v7 }
 0x1f3   :  { %1432 = vst.msk [vmem:[%s2690_s7 + $0xf0] sm:$0xff] %vm1401_vm3, %v1368_v8 }
 0x1f7   :  { %v1335_v9 = vpop.xlane.xlu2 %1334 }
 0x1f8   :  { %v1241_v10 = vpop.xlane.xlu1 %1240  ;;  %v1328_v11 = vpop.xlane.xlu0 %1327  ;;  %v1400_v13 = vadd.f32 %v2258_v31, %v1335_v9 }
 0x1f9   :  { %v1369_v14 = vadd.f32 %v2258_v31, %v1241_v10  ;;  %v1398_v29 = vadd.f32 %v2258_v31, %v1328_v11 }
 0x1fa   :  { %1465 = vst.msk [vmem:[%s2690_s7 + $0x1f0] sm:$0xf] %vm1464_vm5, %v1400_v13 }
 0x1fb   :  { %1433 = vst.msk [vmem:[%s2690_s7 + $0xf8] sm:$0xff] %vm1401_vm3, %v1369_v14 }
 0x1fc   :  { %1462 = vst.msk [vmem:[%s2690_s7 + $0x1e0] sm:$0xff] %vm1401_vm3, %v1398_v29 }
 0x200   :  { %v1331_v15 = vpop.xlane.xlu1 %1330 }
 0x201   :  { %v1399_v16 = vadd.f32 %v2258_v31, %v1331_v15 }
 0x203   :  { %1463 = vst.msk [vmem:[%s2690_s7 + $0x1e8] sm:$0xff] %vm1401_vm3, %v1399_v16 }

</bundles_post_ra>
